<compile_context>
chip_gen: v7x
topology: tpu7x:2x2x1
jax: 0.10.0
libtpu: 0.0.40
codegen_flags: <defaults>
</compile_context>

<pallas_src>
import functools

import jax
import jax.numpy as jnp
from jax.experimental import pallas as pl
from jax.experimental.pallas import tpu as pltpu


LANE = 128  # TPU lane width: feature/node dims are padded to this


def _round_up(v, m):
    return ((v + m - 1) // m) * m


# ----------------------------------------------------------------------------
# Fused kernel.  Grid axis 0 = layer index (sequential carry -> "arbitrary").
# ----------------------------------------------------------------------------
def graph_resnet_kernel(lhat_hbm, x0_ref, w_ref, b_ref, o_ref,
                        lhat_scr, x_scr, *, k_order, f_pad):
    layer = pl.program_id(0)
    n_layers = pl.num_programs(0)

    @pl.when(layer == 0)
    def _():
        # L_hat: copied once into a single-buffered VMEM scratch and kept
        # resident across all layers.
        pltpu.sync_copy(lhat_hbm, lhat_scr)
        x_scr[...] = x0_ref[...]

    lhat = lhat_scr[...]               # [Np, Np] bf16, VMEM-resident
    x = x_scr[...]                     # [Np, Fp] f32 activation carry

    def lmul(z_bf16):                  # bf16 MXU operands, f32 accumulation
        return jnp.dot(lhat, z_bf16, preferred_element_type=jnp.float32)

    # Chebyshev basis: T_0 = x, T_1 = L x, T_k = 2 L T_{k-1} - T_{k-2}.
    # bf16 casts are materialized once and reused by the recursion and the
    # packed feature matmul (keeps the concat temporary at half width).
    zs_f32 = [x]
    zs_bf = [x.astype(jnp.bfloat16)]
    if k_order >= 2:
        t1 = lmul(zs_bf[0])
        zs_f32.append(t1)
        zs_bf.append(t1.astype(jnp.bfloat16))
    for _ in range(2, k_order):
        tk = 2.0 * lmul(zs_bf[-1]) - zs_f32[-2]
        zs_f32.append(tk)
        zs_bf.append(tk.astype(jnp.bfloat16))

    # K per-order feature matmuls + the order-1 skip projection packed into
    # one wide MXU pass: [Np, K*Fp] @ [K*Fp, 2*Fp].
    zcat = zs_bf[0] if k_order == 1 else jnp.concatenate(zs_bf, axis=-1)
    pre = jnp.dot(zcat, w_ref[0], preferred_element_type=jnp.float32) + b_ref[0]
    kipf = pre[:, :f_pad]              # ChebConv_K(x) + bias
    skip = pre[:, f_pad:]              # x @ Ws + bias_skip (zero on mix layer)

    @pl.when(layer < n_layers - 1)
    def _():
        # Kipfblock (bn=False): relu(ChebConv_K(x)); dropout = identity (eval).
        x_scr[...] = jnp.maximum(kipf, 0.0) + skip

    @pl.when(layer == n_layers - 1)
    def _():
        # conv_mix: plain ChebConv_{K_mix}, no relu, no skip.
        o_ref[...] = kipf.astype(o_ref.dtype)


# ----------------------------------------------------------------------------
# Wrapper
# ----------------------------------------------------------------------------
@functools.partial(jax.jit, static_argnames=("num_classes",))
def graph_resnet_forward(x, lhat, w_all, b_all, *, num_classes):
    n, f_in = x.shape
    n_layers, k_fp, two_fp = w_all.shape
    f_pad = two_fp // 2
    k_order = k_fp // f_pad
    n_pad = _round_up(n, LANE)

    # Zero-padding of nodes/features is an exact no-op through the network.
    x_p = jnp.zeros((n_pad, f_pad), jnp.float32).at[:n, :f_in].set(x)
    lhat_p = jnp.zeros((n_pad, n_pad), jnp.float32).at[:n, :n].set(lhat)
    lhat_p = lhat_p.astype(jnp.bfloat16)   # halves L_hat HBM traffic + VMEM

    # VMEM budget: single-buffered L_hat scratch + carry scratch + pipelined
    # (double-buffered) x0/weights/bias/output blocks + in-kernel temporaries.
    lhat_b = n_pad * n_pad * 2
    x_b = n_pad * f_pad * 4
    w_b = k_fp * two_fp * 2
    b_b = two_fp * 4
    out_b = n_pad * f_pad * 4
    tmp_b = n_pad * f_pad * (6 * k_order + 4) * 4 // 4   # zs (f32+bf16), zcat, pre
    vmem_needed = lhat_b + x_b + 2 * (x_b + w_b + b_b + out_b) + tmp_b
    vmem_limit = int(min(64 << 20, max(32 << 20, vmem_needed + (8 << 20))))

    flops = n_layers * (2 * n_pad * n_pad * f_pad * (k_order - 1)
                        + 2 * n_pad * k_fp * two_fp)
    bytes_accessed = lhat_b + x_b + n_layers * (w_b + b_b) + out_b

    kernel = functools.partial(graph_resnet_kernel, k_order=k_order, f_pad=f_pad)
    out_p = pl.pallas_call(
        kernel,
        out_shape=jax.ShapeDtypeStruct((n_pad, f_pad), jnp.float32),
        grid=(n_layers,),
        in_specs=[
            pl.BlockSpec(memory_space=pl.ANY),                     # L_hat (raw HBM)
            pl.BlockSpec((n_pad, f_pad), lambda l: (0, 0)),        # x0 (once)
            pl.BlockSpec((1, k_fp, two_fp), lambda l: (l, 0, 0)),  # packed weights
            pl.BlockSpec((1, 1, two_fp), lambda l: (l, 0, 0)),     # packed biases
        ],
        out_specs=pl.BlockSpec((n_pad, f_pad), lambda l: (0, 0)),
        scratch_shapes=[
            pltpu.VMEM((n_pad, n_pad), jnp.bfloat16),  # resident L_hat
            pltpu.VMEM((n_pad, f_pad), jnp.float32),   # activation carry
        ],
        compiler_params=pltpu.CompilerParams(
            dimension_semantics=("arbitrary",),
            vmem_limit_bytes=vmem_limit,
        ),
        cost_estimate=pl.CostEstimate(
            flops=flops, transcendentals=0, bytes_accessed=bytes_accessed),
    )(lhat_p, x_p, w_all, b_all)

    return out_p[:n, :num_classes]


# ----------------------------------------------------------------------------
# Graph glue: edge_index -> scaled Chebyshev Laplacian (sym norm, lambda_max=2)
# ----------------------------------------------------------------------------
def scaled_laplacian(edge_index, num_nodes):
    row, col = edge_index
    adj = jnp.zeros((num_nodes, num_nodes), jnp.float32).at[row, col].add(1.0)
    adj = adj * (1.0 - jnp.eye(num_nodes, dtype=jnp.float32))  # drop self loops
    deg = adj.sum(axis=1)
    dinv = jnp.where(deg > 0.0, 1.0 / jnp.sqrt(jnp.maximum(deg, 1e-12)), 0.0)
    # L_hat = (2/lambda_max)(I - D^-1/2 A D^-1/2) - I  with lambda_max = 2
    return -(dinv[:, None] * adj * dinv[None, :])


# ----------------------------------------------------------------------------
# Parameters + packing into the fused kernel layout
# ----------------------------------------------------------------------------
def init_params(key, num_features, num_classes, nh, K, K_mix, depth):
    params = {"blocks": []}
    dims = [num_features] + [nh] * depth
    for i in range(depth):
        key, k1, k2 = jax.random.split(key, 3)
        f_in, f_out = dims[i], dims[i + 1]
        w = jax.random.normal(k1, (K, f_in, f_out), jnp.float32) / jnp.sqrt(
            jnp.float32(f_in * K))
        b = jnp.zeros((1, f_out), jnp.float32)
        ws = jax.random.normal(k2, (1, f_in, f_out), jnp.float32) / jnp.sqrt(
            jnp.float32(f_in))
        bs = jnp.zeros((1, f_out), jnp.float32)
        params["blocks"].append((w, b, ws, bs))
    key, k3 = jax.random.split(key)
    params["w_mix"] = jax.random.normal(
        k3, (K_mix, dims[-1], num_classes), jnp.float32) / jnp.sqrt(
        jnp.float32(dims[-1] * K_mix))
    params["b_mix"] = jnp.zeros((1, num_classes), jnp.float32)
    return params


def pack_params(params, *, K, f_pad):
    """Stack per-layer weights for the fused kernel.

    w_all[l] : [K*f_pad, 2*f_pad] bf16
        rows k*f_pad:(k+1)*f_pad, cols [0:f_pad)        -> ChebConv weight W_k
        rows [0:f_pad),           cols [f_pad:2*f_pad)  -> skip projection Ws
    b_all[l] : [1, 2*f_pad] f32 = [cheb bias | skip bias]
    Layer `depth` is conv_mix: K_mix orders occupy slots 0..K_mix-1, skip half
    stays zero (no skip / no relu on that layer).
    """
    blocks = params["blocks"]
    depth = len(blocks)
    n_layers = depth + 1
    w_all = jnp.zeros((n_layers, K * f_pad, 2 * f_pad), jnp.float32)
    b_all = jnp.zeros((n_layers, 1, 2 * f_pad), jnp.float32)
    for l, (w, b, ws, bs) in enumerate(blocks):
        k_l, f_in, f_out = w.shape
        for k in range(k_l):
            w_all = w_all.at[l, k * f_pad:k * f_pad + f_in, :f_out].set(w[k])
        w_all = w_all.at[l, :f_in, f_pad:f_pad + f_out].set(ws[0])
        b_all = b_all.at[l, 0, :f_out].set(b[0])
        b_all = b_all.at[l, 0, f_pad:f_pad + f_out].set(bs[0])
    wm, bm = params["w_mix"], params["b_mix"]
    k_m, f_in_m, f_out_m = wm.shape
    assert k_m <= K, "K_mix must be <= K for the stacked layout"
    for k in range(k_m):
        w_all = w_all.at[-1, k * f_pad:k * f_pad + f_in_m, :f_out_m].set(wm[k])
    b_all = b_all.at[-1, 0, :f_out_m].set(bm[0])
    return w_all.astype(jnp.bfloat16), b_all


# ----------------------------------------------------------------------------
# Pure-JAX reference with matching numerics (bf16 MXU operands, f32 accum)
# ----------------------------------------------------------------------------
def _ref_cheb(lhat_bf16, x, w, b):
    K = w.shape[0]

    def lmul(z):
        return jnp.dot(lhat_bf16, z.astype(jnp.bfloat16),
                       preferred_element_type=jnp.float32)

    def fdot(z, wk):
        return jnp.dot(z.astype(jnp.bfloat16), wk.astype(jnp.bfloat16),
                       preferred_element_type=jnp.float32)

    zs = [x]
    if K >= 2:
        zs.append(lmul(x))
    for _ in range(2, K):
        zs.append(2.0 * lmul(zs[-1]) - zs[-2])
    acc = fdot(zs[0], w[0])
    for k in range(1, K):
        acc = acc + fdot(zs[k], w[k])
    return acc + b


def _ref_forward(x, lhat, params):
    lhat_bf16 = lhat.astype(jnp.bfloat16)
    h = x
    for (w, b, ws, bs) in params["blocks"]:
        skip = jnp.dot(h.astype(jnp.bfloat16), ws[0].astype(jnp.bfloat16),
                       preferred_element_type=jnp.float32) + bs
        h = jnp.maximum(_ref_cheb(lhat_bf16, h, w, b), 0.0) + skip
    return _ref_cheb(lhat_bf16, h, params["w_mix"], params["b_mix"])


# ----------------------------------------------------------------------------
if __name__ == "__main__":
    N = 16            # nodes
    NUM_FEATURES = 8
    NUM_CLASSES = 4
    NH = 32
    K = 4
    K_MIX = 2
    DEPTH = 3

    key = jax.random.PRNGKey(0)
    key, kx = jax.random.split(key)
    x = jax.random.normal(kx, (N, NUM_FEATURES), jnp.float32)

    # Ring graph (undirected -> both directions), like data.edge_index.
    src = jnp.arange(N, dtype=jnp.int32)
    dst = (src + 1) % N
    edge_index = jnp.stack(
        [jnp.concatenate([src, dst]), jnp.concatenate([dst, src])], axis=0)

    lhat = scaled_laplacian(edge_index, N)
    params = init_params(key, NUM_FEATURES, NUM_CLASSES, NH, K, K_MIX, DEPTH)

    F_PAD = _round_up(max(NUM_FEATURES, NH, NUM_CLASSES), LANE)
    w_all, b_all = pack_params(params, K=K, f_pad=F_PAD)

    out = graph_resnet_forward(x, lhat, w_all, b_all, num_classes=NUM_CLASSES)
    out = jax.block_until_ready(out)

    ref = _ref_forward(x, lhat, params)
    assert out.shape == (N, NUM_CLASSES), out.shape
    max_err = float(jnp.max(jnp.abs(out - ref)))
    assert jnp.allclose(out, ref, atol=2e-3, rtol=2e-3), max_err

    print("KERNEL_OK")
</pallas_src>

<mosaic_0001>
module attributes {stable_mosaic.version = 11 : i64} {
  func.func @graph_resnet_kernel(%arg0: i32, %arg1: memref<128x128xbf16, #tpu.memory_space<any>>, %arg2: memref<128x128xf32, #tpu.memory_space<vmem>>, %arg3: memref<1x512x256xbf16, #tpu.memory_space<vmem>>, %arg4: memref<1x1x256xf32, #tpu.memory_space<vmem>>, %arg5: memref<128x128xf32, #tpu.memory_space<vmem>>, %arg6: memref<128x128xbf16, #tpu.memory_space<vmem>>, %arg7: memref<128x128xf32, #tpu.memory_space<vmem>>) attributes {dimension_semantics = [#tpu.dimension_semantics<arbitrary>], iteration_bounds = array<i64: 4>, scalar_prefetch = 0 : i64, scratch_operands = 2 : i64, tpu.core_type = #tpu.core_type<tc>, window_params = [{}, {pipeline_mode = #tpu.pipeline_mode<synchronous>, transform_indices = @transform_1, window_bounds = array<i64: 128, 128>}, {transform_indices = @transform_2, window_bounds = array<i64: 1, 512, 256>}, {transform_indices = @transform_3, window_bounds = array<i64: 1, 1, 256>}, {pipeline_mode = #tpu.pipeline_mode<synchronous>, transform_indices = @transform_4, window_bounds = array<i64: 128, 128>}]} {
    %c0_i32 = arith.constant 0 : i32
    %0 = arith.cmpi eq, %arg0, %c0_i32 : i32
    %1 = arith.extui %0 : i1 to i32
    %c0_i32_0 = arith.constant 0 : i32
    %2 = arith.cmpi ne, %1, %c0_i32_0 : i32
    scf.if %2 {
      "tpu.region"() ({
        %36 = tpu.sem_alloc : memref<!tpu.dma_semaphore, #tpu.memory_space<semaphore_mem>>
        tpu.enqueue_dma source(%arg1 : memref<128x128xbf16, #tpu.memory_space<any>>) target(%arg6 : memref<128x128xbf16, #tpu.memory_space<vmem>>) target_semaphore(%36 : memref<!tpu.dma_semaphore, #tpu.memory_space<semaphore_mem>>)
        tpu.wait_dma2 semaphore(%36 : memref<!tpu.dma_semaphore, #tpu.memory_space<semaphore_mem>>) src(%arg1 : memref<128x128xbf16, #tpu.memory_space<any>>) dst(%arg6 : memref<128x128xbf16, #tpu.memory_space<vmem>>)
        tpu.yield
      }) : () -> ()
      %c0_18 = arith.constant 0 : index
      %c0_19 = arith.constant 0 : index
      %34 = vector.load %arg2[%c0_18, %c0_19] : memref<128x128xf32, #tpu.memory_space<vmem>>, vector<128x128xf32>
      %c0_20 = arith.constant 0 : index
      %c0_21 = arith.constant 0 : index
      %35 = vector.load %arg7[%c0_20, %c0_21] : memref<128x128xf32, #tpu.memory_space<vmem>>, vector<128x128xf32>
      tpu.vector_store %arg7[%c0_20, %c0_21], %34 {strides = array<i32>} : memref<128x128xf32, #tpu.memory_space<vmem>>, vector<128x128xf32>,
    } else {
    }
    %c0 = arith.constant 0 : index
    %c0_1 = arith.constant 0 : index
    %3 = vector.load %arg6[%c0, %c0_1] : memref<128x128xbf16, #tpu.memory_space<vmem>>, vector<128x128xbf16>
    %c0_2 = arith.constant 0 : index
    %c0_3 = arith.constant 0 : index
    %4 = vector.load %arg7[%c0_2, %c0_3] : memref<128x128xf32, #tpu.memory_space<vmem>>, vector<128x128xf32>
    %5 = arith.truncf %4 : vector<128x128xf32> to vector<128x128xbf16>
    %cst = arith.constant dense<0.000000e+00> : vector<128x128xf32>
    %6 = tpu.matmul %3, %5, %cst {dimension_numbers = #tpu.dot_dimension_numbers<[1], [0], [0], [1], [0, 0, 1, 1], [], []>} : vector<128x128xbf16>, vector<128x128xbf16>, vector<128x128xf32> -> vector<128x128xf32>
    %7 = arith.truncf %6 : vector<128x128xf32> to vector<128x128xbf16>
    %cst_4 = arith.constant dense<0.000000e+00> : vector<128x128xf32>
    %8 = tpu.matmul %3, %7, %cst_4 {dimension_numbers = #tpu.dot_dimension_numbers<[1], [0], [0], [1], [0, 0, 1, 1], [], []>} : vector<128x128xbf16>, vector<128x128xbf16>, vector<128x128xf32> -> vector<128x128xf32>
    %cst_5 = arith.constant 2.000000e+00 : f32
    %9 = vector.broadcast %cst_5 : f32 to vector<128x128xf32>
    %10 = arith.mulf %9, %8 : vector<128x128xf32>
    %11 = arith.subf %10, %4 : vector<128x128xf32>
    %12 = arith.truncf %11 : vector<128x128xf32> to vector<128x128xbf16>
    %cst_6 = arith.constant dense<0.000000e+00> : vector<128x128xf32>
    %13 = tpu.matmul %3, %12, %cst_6 {dimension_numbers = #tpu.dot_dimension_numbers<[1], [0], [0], [1], [0, 0, 1, 1], [], []>} : vector<128x128xbf16>, vector<128x128xbf16>, vector<128x128xf32> -> vector<128x128xf32>
    %cst_7 = arith.constant 2.000000e+00 : f32
    %14 = vector.broadcast %cst_7 : f32 to vector<128x128xf32>
    %15 = arith.mulf %14, %13 : vector<128x128xf32>
    %16 = arith.subf %15, %6 : vector<128x128xf32>
    %17 = arith.truncf %16 : vector<128x128xf32> to vector<128x128xbf16>
    %18 = tpu.concatenate %5, %7, %12, %17 in 1 : vector<128x128xbf16>, vector<128x128xbf16>, vector<128x128xbf16>, vector<128x128xbf16> -> vector<128x512xbf16>
    %c0_8 = arith.constant 0 : index
    %c0_9 = arith.constant 0 : index
    %c0_10 = arith.constant 0 : index
    %19 = vector.load %arg3[%c0_8, %c0_9, %c0_10] : memref<1x512x256xbf16, #tpu.memory_space<vmem>>, vector<1x512x256xbf16>
    %20 = vector.shape_cast %19 : vector<1x512x256xbf16> to vector<512x256xbf16>
    %cst_11 = arith.constant dense<0.000000e+00> : vector<128x256xf32>
    %21 = tpu.matmul %18, %20, %cst_11 {dimension_numbers = #tpu.dot_dimension_numbers<[1], [0], [0], [1], [0, 0, 1, 1], [], []>} : vector<128x512xbf16>, vector<512x256xbf16>, vector<128x256xf32> -> vector<128x256xf32>
    %c0_12 = arith.constant 0 : index
    %c0_13 = arith.constant 0 : index
    %c0_14 = arith.constant 0 : index
    %22 = vector.load %arg4[%c0_12, %c0_13, %c0_14] : memref<1x1x256xf32, #tpu.memory_space<vmem>>, vector<1x1x256xf32>
    %23 = vector.shape_cast %22 : vector<1x1x256xf32> to vector<1x256xf32>
    %24 = vector.broadcast %23 : vector<1x256xf32> to vector<128x256xf32>
    %25 = arith.addf %21, %24 : vector<128x256xf32>
    %26 = vector.extract_strided_slice %25 {offsets = [0, 0], sizes = [128, 128], strides = [1, 1]} : vector<128x256xf32> to vector<128x128xf32>
    %27 = vector.extract_strided_slice %25 {offsets = [0, 128], sizes = [128, 128], strides = [1, 1]} : vector<128x256xf32> to vector<128x128xf32>
    %c3_i32 = arith.constant 3 : i32
    %28 = arith.cmpi slt, %arg0, %c3_i32 : i32
    %29 = arith.extui %28 : i1 to i32
    %c0_i32_15 = arith.constant 0 : i32
    %30 = arith.cmpi ne, %29, %c0_i32_15 : i32
    scf.if %30 {
      %cst_18 = arith.constant 0.000000e+00 : f32
      %34 = vector.broadcast %cst_18 : f32 to vector<128x128xf32>
      %35 = arith.maximumf %26, %34 : vector<128x128xf32>
      %36 = arith.addf %35, %27 : vector<128x128xf32>
      %c0_19 = arith.constant 0 : index
      %c0_20 = arith.constant 0 : index
      %37 = vector.load %arg7[%c0_19, %c0_20] : memref<128x128xf32, #tpu.memory_space<vmem>>, vector<128x128xf32>
      tpu.vector_store %arg7[%c0_19, %c0_20], %36 {strides = array<i32>} : memref<128x128xf32, #tpu.memory_space<vmem>>, vector<128x128xf32>,
    } else {
    }
    %c3_i32_16 = arith.constant 3 : i32
    %31 = arith.cmpi eq, %arg0, %c3_i32_16 : i32
    %32 = arith.extui %31 : i1 to i32
    %c0_i32_17 = arith.constant 0 : i32
    %33 = arith.cmpi ne, %32, %c0_i32_17 : i32
    scf.if %33 {
      %c0_18 = arith.constant 0 : index
      %c0_19 = arith.constant 0 : index
      %34 = vector.load %arg5[%c0_18, %c0_19] : memref<128x128xf32, #tpu.memory_space<vmem>>, vector<128x128xf32>
      tpu.vector_store %arg5[%c0_18, %c0_19], %26 {strides = array<i32>} : memref<128x128xf32, #tpu.memory_space<vmem>>, vector<128x128xf32>,
    } else {
    }
    return
  }
  func.func @transform_1(%arg0: i32) -> (i32, i32) {
    %c0_i32 = arith.constant 0 : i32
    %c0_i32_0 = arith.constant 0 : i32
    %c0_i32_1 = arith.constant 0 : i32
    return %c0_i32, %c0_i32_0 : i32, i32
  }
  func.func @transform_2(%arg0: i32) -> (i32, i32, i32) {
    %c0_i32 = arith.constant 0 : i32
    %c0_i32_0 = arith.constant 0 : i32
    %c0_i32_1 = arith.constant 0 : i32
    return %arg0, %c0_i32, %c0_i32_0 : i32, i32, i32
  }
  func.func @transform_3(%arg0: i32) -> (i32, i32, i32) {
    %c0_i32 = arith.constant 0 : i32
    %c0_i32_0 = arith.constant 0 : i32
    %c0_i32_1 = arith.constant 0 : i32
    return %arg0, %c0_i32, %c0_i32_0 : i32, i32, i32
  }
  func.func @transform_4(%arg0: i32) -> (i32, i32) {
    %c0_i32 = arith.constant 0 : i32
    %c0_i32_0 = arith.constant 0 : i32
    %c0_i32_1 = arith.constant 0 : i32
    return %c0_i32, %c0_i32_0 : i32, i32
  }
}

</mosaic_0001>

<bundles_post_ra>
// kernel: graph_resnet_forward.1
= control target key start
LH: loop header
LB: loop body
LE: loop exit
PB: predicated region body
PF: predicated region fallthrough
CT: control target
= control target key end

     0   :  { %9 = vsyncpa [#allocation5], 0  ;;  %s2898_s0 = inlined_call_operand.vmem [shape: bf16[128,128], index: 0, kind: input, shape index: {}]   ;;  %s2899_s1 = inlined_call_operand.vmem [shape: f32[128,128], index: 1, kind: input, shape index: {}]   ;;  %s2900_s2 = inlined_call_operand.hbm [shape: bf16[4,512,256], index: 2, kind: input, shape index: {}]   ;;  %s2901_s3 = inlined_call_operand.vmem [shape: f32[4,1,256], index: 3, kind: input, shape index: {}]   ;;  %s2902_s4 = inlined_call_operand.vmem [shape: f32[128,128], index: 4, kind: output, shape index: {}]  }
   0x1   :  { %11 = vsyncpa [#allocation5 + $0x1], 0  ;;  %s2007_s15 = smov 0   ;;  %s2009_s16 = smov 0  }
   0x2   :  { %s2011_s17 = smov 0   ;;  %s2013_s18 = smov 0  }
   0x3 LB: > { %s2026_s19 = sadd.s32 4294967295, %s1977_s18   ;;  %s2029_s20 = sadd.s32 1, %s1977_s18   ;;  %s1977_s18 = sphi %s2013_s18, %s2969_s18   ;;  %s1973_s17 = sphi %s2011_s17, %s2968_s17   ;;  %s1969_s16 = sphi %s2009_s16, %s2967_s16   ;;  %s1965_s15 = sphi %s2007_s15, %s2966_s15  }
   0x4   : > { %s42_s21 = ssub.s32 %s1977_s18, %s2029_s20  ;;  %s45_s22 = sadd.s32 1, %s1973_s17 }
   0x5   : > { %p43_p0 = scmp.eq.s32.totalorder %s42_s21, 0  ;;  %p52_p1 = scmp.ne.s32.totalorder %s1973_s17, %s1969_s16 }
   0x6   : > { %p53_p2 = scmp.eq.s32.totalorder %s1977_s18, 0  ;;  %p58_p3 = scmp.ne.s32.totalorder %s1969_s16, %s1965_s15 }
   0x7   : > { %s2039_s23 = scalar_select %p43_p0, %s1973_s17, %s45_s22  }
   0x8   : > { %p54_p4 = por %p53_p2, %p52_p1  ;;  %p59_p5 = scmp.eq.s32.totalorder %s2026_s19, 0 }
   0x9   : > { %p1780_p6 = scmp.lt.s32.totalorder %s1977_s18, 4  ;;  %s132_s25 = sand.u32 1, %s1973_s17  }
   0xa   : > { %p2043_p7 = por %p59_p5, %p58_p3  ;;  %s1458_s26 = sshll.u32 %s132_s25, 9 }
   0xb   : > { %s1533_s27 = sshll.u32 %s1977_s18, 13  ;;  %s136_s5 = scalar_lea.vmem [#allocation4], %s1458_s26 }
   0xc   : > { %s2052_s30 = scalar_lea.hbm %s2900_s2, %s1533_s27  ;;  %s143_s6 = sshll.u32 %s136_s5, 4  ;;  %s2054_s6 = int_to_ptr.vmem [resolvable:$true] %s143_s6 }
   0xd   : > { %p2056_p8 = pnand %p1780_p6, %p54_p4  ;;  %s2061_s8 = scalar_lea.sflag [#allocation5], %s132_s25 }
   0xe   : > { %s1911_s9 = scalar_lea.hbm %s2052_s30, 8192  ;;  %s1916_s12 = scalar_lea.hbm %s2900_s2, 32768 }
   0xf   : > { %p1912_p10 = scmp.ne.s32.totalorder %s2052_s30, %s1911_s9  ;;  %p1913_p11 = pneg %p2056_p8 }
  0x10   : > { %p1917_p0 = scmp.lt.u32.totalorder %s2052_s30, %s2900_s2  ;;  %p1918_p1 = scmp.lt.u32.totalorder %s1916_s12, %s1911_s9 }
  0x11   : > { %p1914_p12 = pnand %p1913_p11, %p1912_p10  ;;  %p1920_p3 = scmp.lt.u32.totalorder %s1911_s9, %s2052_s30 }
  0x12   : > { %p1919_p2 = por %p1918_p1, %p1917_p0 }
  0x13   : > { %p1915_p13 = pneg %p1914_p12 }
  0x14   : > { %p1921_p4 = por %p1920_p3, %p1919_p2 }
  0x16   : > { %p1922_p5 = pnand %p1921_p4, %p1915_p13 }
  0x18   : > { %1925 = shalt.err (!%p1922_p5)
}
  0x19   : > { %s1926_s15 = scalar_lea.vmem %s2054_s6, 8192  ;;  %s1979_s21 = smov [#allocation4]  }
  0x1a   : > { %p1927_p6 = scmp.ne.s32.totalorder %s2054_s6, %s1926_s15  ;;  %s1931_s22 = sshll.u32 %s1979_s21, 4  ;;  %s1932_s22 = int_to_ptr.vmem [resolvable:$false] %s1931_s22 }
  0x1b   : > { %s1933_s25 = scalar_lea.vmem %s1932_s22, 16384  ;;  %p1934_p9 = scmp.lt.s32.totalorder %s2054_s6, %s1932_s22 }
  0x1c   : > { %p1929_p10 = pnand %p1927_p6, %p1913_p11  ;;  %p1935_p0 = scmp.lt.s32.totalorder %s1933_s25, %s1926_s15 }
  0x1e   : > { %p1930_p12 = pneg %p1929_p10  ;;  %p1936_p1 = por %p1935_p0, %p1934_p9 }
  0x20   : > { %p1937_p2 = pnand %p1936_p1, %p1930_p12 }
  0x22   : > { %1940 = shalt.err (!%p1937_p2)
}
  0x23   : > { %s1980_s26 = smov 128   ;;  %s1981_s27 = smov 8  }
  0x24   : > { %1779 = dma.hbm_to_vmem [thread:$0]  (!%p2056_p8), %s2052_s30, 8192, %s2054_s6, %s2061_s8, %s1980_s26, %s1980_s26, %s1981_s27  }
  0x25   : > { %p158_p11 = scmp.lt.s32.totalorder %s1977_s18, 5  ;;  %p2925_p13 = scmp.ge.s32.totalorder %s1977_s18, 1 }
  0x27   : > { %p159_p3 = pnand %p2925_p13, %p158_p11 }
  0x29   : > { %162 = sbr.rel (%p159_p3) target bundleno = 1107 (0x453), region = 32 }
  0x30   : > { %s164_s28 = sand.u32 1, %s1969_s16  }
  0x31   : > { %s1462_s29 = sshll.u32 %s164_s28, 9  ;;  %s165_s5 = scalar_lea.sflag [#allocation5], %s164_s28 }
  0x32   : > { %s2093_s9 = scalar_lea.vmem [#allocation4], %s1462_s29 }
  0x33   : > { %1958 = dma.done.wait (%p2043_p7), %s165_s5, 8192  }
  0x34   : > { %1960 = vsyncadd (%p2043_p7), %s165_s5, 4294959104  ;;  %p190_p9 = scmp.lt.s32.totalorder %s2026_s19, 3  ;;  %p1464_p8 = scmp.ne.s32.totalorder %s2026_s19, 0 }
  0x36   : > { %s191_s30 = scalar_select %p190_p9, %s2026_s19, 3 }
  0x37   : > { %198 = sbr.rel (%p1464_p8) target bundleno = 78 (0x4e), region = 40 }
  0x38   : > { %s1463_s6 = sshll.u32 %s191_s30, 1 }
  0x39   : > { %s2104_s8 = scalar_lea.vmem %s2901_s3, %s1463_s6 }
  0x3e   : > { %v231_v0 = vld [vmem:[%s2898_s0] sm:$0xff]  ;;  %v233_v1 = vld [vmem:[%s2898_s0 + $0x8] sm:$0xff]  ;;  %v235_v2 = vld [vmem:[%s2898_s0 + $0x10] sm:$0xff] }
  0x3f   : > { %232 = vst [vmem:[#allocation2] sm:$0xff] %v231_v0  ;;  %234 = vst [vmem:[#allocation2 + $0x8] sm:$0xff] %v233_v1  ;;  %v237_v3 = vld [vmem:[%s2898_s0 + $0x18] sm:$0xff]  ;;  %v239_v4 = vld [vmem:[%s2898_s0 + $0x20] sm:$0xff] }
  0x40   : > { %236 = vst [vmem:[#allocation2 + $0x10] sm:$0xff] %v235_v2  ;;  %v241_v5 = vld [vmem:[%s2898_s0 + $0x28] sm:$0xff]  ;;  %238 = vst [vmem:[#allocation2 + $0x18] sm:$0xff] %v237_v3  ;;  %v243_v6 = vld [vmem:[%s2898_s0 + $0x30] sm:$0xff] }
  0x41   : > { %240 = vst [vmem:[#allocation2 + $0x20] sm:$0xff] %v239_v4  ;;  %242 = vst [vmem:[#allocation2 + $0x28] sm:$0xff] %v241_v5  ;;  %v245_v7 = vld [vmem:[%s2898_s0 + $0x38] sm:$0xff] }
  0x42   : > { %244 = vst [vmem:[#allocation2 + $0x30] sm:$0xff] %v243_v6  ;;  %246 = vst [vmem:[#allocation2 + $0x38] sm:$0xff] %v245_v7 }
  0x43   : > { %254 = vsyncadd [#allocation6], 1024 }
  0x44   : > { %1961 = dma.done.wait [#allocation6], 1024 }
  0x45   : > { %1962 = vsyncadd [#allocation6], 4294966272  ;;  %v259_v8 = vld [vmem:[%s2899_s1] sm:$0xff]  ;;  %v260_v9 = vld [vmem:[%s2899_s1 + $0x8] sm:$0xff] }
  0x46   : > { %v261_v10 = vld [vmem:[%s2899_s1 + $0x10] sm:$0xff]  ;;  %275 = vst [vmem:[#allocation3] sm:$0xff] %v259_v8  ;;  %276 = vst [vmem:[#allocation3 + $0x8] sm:$0xff] %v260_v9  ;;  %v262_v11 = vld [vmem:[%s2899_s1 + $0x18] sm:$0xff] }
  0x47   : > { %277 = vst [vmem:[#allocation3 + $0x10] sm:$0xff] %v261_v10  ;;  %v263_v12 = vld [vmem:[%s2899_s1 + $0x20] sm:$0xff]  ;;  %v264_v13 = vld [vmem:[%s2899_s1 + $0x28] sm:$0xff]  ;;  %278 = vst [vmem:[#allocation3 + $0x18] sm:$0xff] %v262_v11 }
  0x48   : > { %279 = vst [vmem:[#allocation3 + $0x20] sm:$0xff] %v263_v12  ;;  %280 = vst [vmem:[#allocation3 + $0x28] sm:$0xff] %v264_v13  ;;  %v265_v14 = vld [vmem:[%s2899_s1 + $0x30] sm:$0xff]  ;;  %v266_v15 = vld [vmem:[%s2899_s1 + $0x38] sm:$0xff] }
  0x49   : > { %v267_v16 = vld [vmem:[%s2899_s1 + $0x40] sm:$0xff]  ;;  %281 = vst [vmem:[#allocation3 + $0x30] sm:$0xff] %v265_v14  ;;  %282 = vst [vmem:[#allocation3 + $0x38] sm:$0xff] %v266_v15  ;;  %v268_v17 = vld [vmem:[%s2899_s1 + $0x48] sm:$0xff] }
  0x4a   : > { %283 = vst [vmem:[#allocation3 + $0x40] sm:$0xff] %v267_v16  ;;  %v269_v18 = vld [vmem:[%s2899_s1 + $0x50] sm:$0xff]  ;;  %v270_v19 = vld [vmem:[%s2899_s1 + $0x58] sm:$0xff]  ;;  %284 = vst [vmem:[#allocation3 + $0x48] sm:$0xff] %v268_v17 }
  0x4b   : > { %285 = vst [vmem:[#allocation3 + $0x50] sm:$0xff] %v269_v18  ;;  %286 = vst [vmem:[#allocation3 + $0x58] sm:$0xff] %v270_v19  ;;  %v271_v20 = vld [vmem:[%s2899_s1 + $0x60] sm:$0xff]  ;;  %v272_v21 = vld [vmem:[%s2899_s1 + $0x68] sm:$0xff] }
  0x4c   : > { %v273_v22 = vld [vmem:[%s2899_s1 + $0x70] sm:$0xff]  ;;  %287 = vst [vmem:[#allocation3 + $0x60] sm:$0xff] %v271_v20  ;;  %288 = vst [vmem:[#allocation3 + $0x68] sm:$0xff] %v272_v21  ;;  %v274_v23 = vld [vmem:[%s2899_s1 + $0x78] sm:$0xff] }
  0x4d   : > { %289 = vst [vmem:[#allocation3 + $0x70] sm:$0xff] %v273_v22  ;;  %290 = vst [vmem:[#allocation3 + $0x78] sm:$0xff] %v274_v23 }
  0x4e PF: > { %v2179_v24 = vld [vmem:[#allocation3] sm:$0xff]  ;;  %v2181_v25 = vld [vmem:[#allocation3 + $0x8] sm:$0xff]  ;;  %v2183_v26 = vld [vmem:[#allocation3 + $0x10] sm:$0xff]  ;;  %p1529_p7 = scmp.ge.s32.totalorder %s2026_s19, 3 }
  0x4f   : > { %v2187_v27 = vpack.c.bf16 %v2181_v25, %v2179_v24  ;;  %v2189_v28 = vld [vmem:[#allocation3 + $0x18] sm:$0xff]  ;;  %v2195_v30 = vld [vmem:[#allocation3 + $0x20] sm:$0xff]  ;;  %v2197_v31 = vld [vmem:[#allocation3 + $0x28] sm:$0xff] }
  0x50   : > { %v2193_v29 = vpack.c.bf16 %v2189_v28, %v2183_v26  ;;  %v2204_v32 = vpack.c.bf16 %v2197_v31, %v2195_v30  ;;  %v291_v33 = vld [vmem:[#allocation2] sm:$0xff]  ;;  %v2206_v34 = vld [vmem:[#allocation3 + $0x30] sm:$0xff]  ;;  %v2208_v35 = vld [vmem:[#allocation3 + $0x38] sm:$0xff] }
  0x51   : > { %1582 = vmatprep.subr.bf16.mxu0 %v2187_v27  ;;  %1598 = vmatprep.mubr.bf16.mxu0 %v291_v33  ;;  %v2211_v36 = vld [vmem:[#allocation3 + $0x40] sm:$0xff]  ;;  %v2213_v37 = vld [vmem:[#allocation3 + $0x48] sm:$0xff]  ;;  %v2218_v38 = vpack.c.bf16 %v2208_v35, %v2206_v34  ;;  %v2261_v50 = vld [vmem:[#allocation2 + $0x10] sm:$0xff] }
  0x52   : > { %1583 = vmatpush3.bf16.msra.mxu0 %v2187_v27  ;;  %1630 = vmatprep.mubr.bf16.mxu1 %v291_v33  ;;  %v2221_v39 = vld [vmem:[#allocation3 + $0x50] sm:$0xff]  ;;  %v2223_v40 = vld [vmem:[#allocation3 + $0x58] sm:$0xff]  ;;  %v2228_v41 = vpack.c.bf16 %v2213_v37, %v2211_v36  ;;  %v2259_v49 = vld [vmem:[#allocation2 + $0x8] sm:$0xff] }
  0x53   : > { %1584 = vmatprep.subr.bf16.mxu0 %v2193_v29  ;;  %v2231_v42 = vld [vmem:[#allocation3 + $0x60] sm:$0xff]  ;;  %v2233_v43 = vld [vmem:[#allocation3 + $0x68] sm:$0xff]  ;;  %v2238_v44 = vpack.c.bf16 %v2223_v40, %v2221_v39  ;;  %v2265_v51 = vld [vmem:[#allocation2 + $0x18] sm:$0xff] }
  0x54   : > { %v2241_v45 = vld [vmem:[#allocation3 + $0x70] sm:$0xff]  ;;  %v2243_v46 = vld [vmem:[#allocation3 + $0x78] sm:$0xff]  ;;  %v2248_v47 = vpack.c.bf16 %v2233_v43, %v2231_v42  ;;  %v2267_v52 = vld [vmem:[#allocation2 + $0x20] sm:$0xff] }
  0x55   : > { %v2254_v48 = vpack.c.bf16 %v2243_v46, %v2241_v45  ;;  %v2271_v53 = vld [vmem:[#allocation2 + $0x28] sm:$0xff]  ;;  %v2273_v54 = vld [vmem:[#allocation2 + $0x30] sm:$0xff]  ;;  %v2277_v55 = vld [vmem:[#allocation2 + $0x38] sm:$0xff] }
  0x56   : > { %1585 = vmatpush3.bf16.msra.mxu0 %v2193_v29  ;;  %v1817_v16 = vld [vmem:[%s2093_s9 + $0x4] ss:$8 sps:$4 sm:$0xff]   ;;  %v1815_v17 = vld [vmem:[%s2093_s9] ss:$8 sps:$4 sm:$0xff]   ;;  %v1820_v18 = vld [vmem:[%s2093_s9 + $0x14] ss:$8 sps:$4 sm:$0xff]  }
  0x57   : > { %1586 = vmatprep.subr.bf16.mxu0 %v2204_v32  ;;  %v1818_v19 = vld [vmem:[%s2093_s9 + $0x10] ss:$8 sps:$4 sm:$0xff]   ;;  %v1823_v20 = vld [vmem:[%s2093_s9 + $0x24] ss:$8 sps:$4 sm:$0xff]   ;;  %v1821_v21 = vld [vmem:[%s2093_s9 + $0x20] ss:$8 sps:$4 sm:$0xff]  }
  0x58   : > { %v1826_v22 = vld [vmem:[%s2093_s9 + $0x34] ss:$8 sps:$4 sm:$0xff]   ;;  %v1824_v23 = vld [vmem:[%s2093_s9 + $0x30] ss:$8 sps:$4 sm:$0xff]  }
  0x5a   : > { %1587 = vmatpush3.bf16.msra.mxu0 %v2204_v32 }
  0x5b   : > { %1588 = vmatprep.subr.bf16.mxu0 %v2218_v38 }
  0x5e   : > { %1589 = vmatpush3.bf16.msra.mxu0 %v2218_v38 }
  0x5f   : > { %1590 = vmatprep.subr.bf16.mxu0 %v2228_v41 }
  0x62   : > { %1591 = vmatpush3.bf16.msra.mxu0 %v2228_v41 }
  0x63   : > { %1592 = vmatprep.subr.bf16.mxu0 %v2238_v44 }
  0x66   : > { %1593 = vmatpush3.bf16.msra.mxu0 %v2238_v44 }
  0x67   : > { %1594 = vmatprep.subr.bf16.mxu0 %v2248_v47 }
  0x6a   : > { %1595 = vmatpush3.bf16.msra.mxu0 %v2248_v47 }
  0x6b   : > { %1596 = vmatprep.subr.bf16.mxu0 %v2254_v48 }
  0x6e   : > { %1597 = vmatpush3.bf16.msra.mxu0 %v2254_v48 }
  0x71   : > { %1599 = vmatmul.mubr.bf16.vlgmr.msra.gmra.mrb[0].mxu0 %v2259_v49 }
  0x72   : > { %1602 = vmatprep.mubr.bf16.mxu0 %v2261_v50 }
  0x79   : > { %1603 = vmatmul.mubr.bf16.gmra.mrb[4].mxu0 %v2265_v51 }
  0x7a   : > { %1606 = vmatprep.mubr.bf16.mxu0 %v2267_v52 }
  0x81   : > { %1607 = vmatmul.mubr.bf16.gmra.mrb[8].mxu0 %v2271_v53 }
  0x82   : > { %1610 = vmatprep.mubr.bf16.mxu0 %v2273_v54 }
  0x89   : > { %1611 = vmatmul.mubr.bf16.gmra.mrb[12].mxu0 %v2277_v55 }
  0x8a   : > { %1662 = vmatprep.mubr.bf16.mxu0 %v291_v33  ;;  %v1829_v33 = vld [vmem:[%s2093_s9 + $0x44] ss:$8 sps:$4 sm:$0xff]  }
 0x144   : > { %v2280_v56 = vpop.f32.mrb[0].mxu0 }
 0x145   : > { %2926 = vst [vmem:[#allocation10_spill] sm:$0xff] %v2280_v56  ;;  %v2282_v57 = vpop.f32.mrb[1].mxu0 }
 0x146   : > { %2927 = vst [vmem:[#allocation11_spill] sm:$0xff] %v2282_v57  ;;  %v2284_v58 = vpop.f32.mrb[2].mxu0 }
 0x147   : > { %2928 = vst [vmem:[#allocation12_spill] sm:$0xff] %v2284_v58  ;;  %v2288_v59 = vpack.c.bf16 %v2284_v58, %v2280_v56  ;;  %v2290_v60 = vpop.f32.mrb[3].mxu0 }
 0x148   : > { %2929 = vst [vmem:[#allocation13_spill] sm:$0xff] %v2290_v60  ;;  %v2294_v61 = vpack.c.bf16 %v2290_v60, %v2282_v57 }
 0x14a   : > { %1614 = vmatprep.subr.bf16.mxu1 %v2294_v61 }
 0x14b   : > { %1615 = vmatpush3.bf16.msra.mxu1 %v2294_v61 }
 0x14c   : > { %v2298_v62 = vpop.f32.mrb[4].mxu0  ;;  %1616 = vmatprep.subr.bf16.mxu1 %v2288_v59 }
 0x14d   : > { %2930 = vst [vmem:[#allocation14_spill] sm:$0xff] %v2298_v62  ;;  %v2301_v63 = vpop.f32.mrb[5].mxu0 }
 0x14e   : > { %2931 = vst [vmem:[#allocation15_spill] sm:$0xff] %v2301_v63  ;;  %v2303_v0 = vpop.f32.mrb[6].mxu0 }
 0x14f   : > { %2932 = vst [vmem:[#allocation16_spill] sm:$0xff] %v2303_v0  ;;  %v2307_v1 = vpack.c.bf16 %v2303_v0, %v2298_v62  ;;  %v2309_v2 = vpop.f32.mrb[7].mxu0  ;;  %1617 = vmatpush3.bf16.msra.mxu1 %v2288_v59 }
 0x150   : > { %2933 = vst [vmem:[#allocation17_spill] sm:$0xff] %v2309_v2  ;;  %v2314_v3 = vpack.c.bf16 %v2309_v2, %v2301_v63 }
 0x152   : > { %1618 = vmatprep.subr.bf16.mxu1 %v2314_v3 }
 0x153   : > { %1619 = vmatpush3.bf16.msra.mxu1 %v2314_v3 }
 0x154   : > { %v2318_v4 = vpop.f32.mrb[8].mxu0  ;;  %1620 = vmatprep.subr.bf16.mxu1 %v2307_v1 }
 0x155   : > { %2934 = vst [vmem:[#allocation18_spill] sm:$0xff] %v2318_v4  ;;  %v2321_v5 = vpop.f32.mrb[9].mxu0 }
 0x156   : > { %2935 = vst [vmem:[#allocation19_spill] sm:$0xff] %v2321_v5  ;;  %v2323_v6 = vpop.f32.mrb[10].mxu0 }
 0x157   : > { %2936 = vst [vmem:[#allocation20_spill] sm:$0xff] %v2323_v6  ;;  %v2327_v7 = vpack.c.bf16 %v2323_v6, %v2318_v4  ;;  %v2329_v8 = vpop.f32.mrb[11].mxu0  ;;  %1621 = vmatpush3.bf16.msra.mxu1 %v2307_v1 }
 0x158   : > { %2937 = vst [vmem:[#allocation21_spill] sm:$0xff] %v2329_v8  ;;  %v2334_v9 = vpack.c.bf16 %v2329_v8, %v2321_v5 }
 0x15a   : > { %1622 = vmatprep.subr.bf16.mxu1 %v2334_v9 }
 0x15b   : > { %1623 = vmatpush3.bf16.msra.mxu1 %v2334_v9 }
 0x15c   : > { %v2338_v10 = vpop.f32.mrb[12].mxu0  ;;  %1624 = vmatprep.subr.bf16.mxu1 %v2327_v7 }
 0x15d   : > { %2938 = vst [vmem:[#allocation22_spill] sm:$0xff] %v2338_v10  ;;  %v2341_v11 = vpop.f32.mrb[13].mxu0 }
 0x15e   : > { %2939 = vst [vmem:[#allocation23_spill] sm:$0xff] %v2341_v11  ;;  %v2343_v12 = vpop.f32.mrb[14].mxu0 }
 0x15f   : > { %2940 = vst [vmem:[#allocation24_spill] sm:$0xff] %v2343_v12  ;;  %v2347_v13 = vpack.c.bf16 %v2343_v12, %v2338_v10  ;;  %v2349_v14 = vpop.f32.mrb[15].mxu0  ;;  %1625 = vmatpush3.bf16.msra.mxu1 %v2327_v7  ;;  %v2519_v12 = vld [vmem:[%s2093_s9 + $0x1d4] ss:$8 sps:$4 sm:$0xff]  }
 0x160   : > { %2941 = vst [vmem:[#allocation25_spill] sm:$0xff] %v2349_v14  ;;  %v2354_v15 = vpack.c.bf16 %v2349_v14, %v2341_v11  ;;  %v1862_v14 = vld [vmem:[%s2093_s9 + $0xf4] ss:$8 sps:$4 sm:$0xff]   ;;  %2944 = vst [vmem:[#allocation28_spill] sm:$0xff] %v2519_v12  ;;  %v2524_v11 = vld [vmem:[%s2093_s9 + $0x1d0] ss:$8 sps:$4 sm:$0xff]  }
 0x161   : > { %2945 = vst [vmem:[#allocation29_spill] sm:$0xff] %v2524_v11 }
 0x162   : > { %1626 = vmatprep.subr.bf16.mxu1 %v2354_v15 }
 0x163   : > { %1627 = vmatpush3.bf16.msra.mxu1 %v2354_v15 }
 0x164   : > { %1628 = vmatprep.subr.bf16.mxu1 %v2347_v13 }
 0x167   : > { %1629 = vmatpush3.bf16.msra.mxu1 %v2347_v13 }
 0x168   : > { %1098 = vmatprep.subr.bf16.mxu1 %v1817_v16  ;;  %v1827_v16 = vld [vmem:[%s2093_s9 + $0x40] ss:$8 sps:$4 sm:$0xff]  }
 0x16a   : > { %1631 = vmatmul.mubr.bf16.vlgmr.msra.gmra.mrb[0].mxu1 %v2259_v49 }
 0x16b   : > { %1099 = vmatpush1.bf16.msra.mxu1 %v1815_v17  ;;  %1634 = vmatprep.mubr.bf16.mxu1 %v2261_v50  ;;  %v1832_v17 = vld [vmem:[%s2093_s9 + $0x54] ss:$8 sps:$4 sm:$0xff]  }
 0x16c   : > { %1100 = vmatprep.subr.bf16.mxu1 %v1820_v18  ;;  %v1830_v18 = vld [vmem:[%s2093_s9 + $0x50] ss:$8 sps:$4 sm:$0xff]  }
 0x16f   : > { %1101 = vmatpush1.bf16.msra.mxu1 %v1818_v19  ;;  %v1835_v19 = vld [vmem:[%s2093_s9 + $0x64] ss:$8 sps:$4 sm:$0xff]  }
 0x170   : > { %1102 = vmatprep.subr.bf16.mxu1 %v1823_v20  ;;  %v1833_v20 = vld [vmem:[%s2093_s9 + $0x60] ss:$8 sps:$4 sm:$0xff]  }
 0x172   : > { %1635 = vmatmul.mubr.bf16.gmra.mrb[4].mxu1 %v2265_v51 }
 0x173   : > { %1103 = vmatpush1.bf16.msra.mxu1 %v1821_v21  ;;  %1638 = vmatprep.mubr.bf16.mxu1 %v2267_v52  ;;  %v1838_v21 = vld [vmem:[%s2093_s9 + $0x74] ss:$8 sps:$4 sm:$0xff]  }
 0x174   : > { %1104 = vmatprep.subr.bf16.mxu1 %v1826_v22  ;;  %v1836_v22 = vld [vmem:[%s2093_s9 + $0x70] ss:$8 sps:$4 sm:$0xff]  }
 0x177   : > { %1105 = vmatpush1.bf16.msra.mxu1 %v1824_v23  ;;  %v1841_v23 = vld [vmem:[%s2093_s9 + $0x84] ss:$8 sps:$4 sm:$0xff]  }
 0x178   : > { %1106 = vmatprep.subr.bf16.mxu1 %v1829_v33  ;;  %v1839_v33 = vld [vmem:[%s2093_s9 + $0x80] ss:$8 sps:$4 sm:$0xff]  }
 0x17a   : > { %1639 = vmatmul.mubr.bf16.gmra.mrb[8].mxu1 %v2271_v53 }
 0x17b   : > { %1107 = vmatpush1.bf16.msra.mxu1 %v1827_v16  ;;  %1642 = vmatprep.mubr.bf16.mxu1 %v2273_v54  ;;  %v1844_v16 = vld [vmem:[%s2093_s9 + $0x94] ss:$8 sps:$4 sm:$0xff]  }
 0x17c   : > { %1108 = vmatprep.subr.bf16.mxu1 %v1832_v17  ;;  %v1842_v17 = vld [vmem:[%s2093_s9 + $0x90] ss:$8 sps:$4 sm:$0xff]  }
 0x17f   : > { %1109 = vmatpush1.bf16.msra.mxu1 %v1830_v18  ;;  %v1847_v18 = vld [vmem:[%s2093_s9 + $0xa4] ss:$8 sps:$4 sm:$0xff]  }
 0x180   : > { %1110 = vmatprep.subr.bf16.mxu1 %v1835_v19  ;;  %v1845_v19 = vld [vmem:[%s2093_s9 + $0xa0] ss:$8 sps:$4 sm:$0xff]  }
 0x182   : > { %1643 = vmatmul.mubr.bf16.gmra.mrb[12].mxu1 %v2277_v55 }
 0x183   : > { %1111 = vmatpush1.bf16.msra.mxu1 %v1833_v20  ;;  %1130 = vmatprep.mubr.bf16.mxu1 %v2294_v61  ;;  %v1850_v61 = vld [vmem:[%s2093_s9 + $0xb4] ss:$8 sps:$4 sm:$0xff]   ;;  %v1848_v20 = vld [vmem:[%s2093_s9 + $0xb0] ss:$8 sps:$4 sm:$0xff]  }
 0x184   : > { %1112 = vmatprep.subr.bf16.mxu1 %v1838_v21  ;;  %v1853_v21 = vld [vmem:[%s2093_s9 + $0xc4] ss:$8 sps:$4 sm:$0xff]  }
 0x187   : > { %1113 = vmatpush1.bf16.msra.mxu1 %v1836_v22  ;;  %v1851_v22 = vld [vmem:[%s2093_s9 + $0xc0] ss:$8 sps:$4 sm:$0xff]  }
 0x188   : > { %1114 = vmatprep.subr.bf16.mxu1 %v1841_v23  ;;  %v1856_v23 = vld [vmem:[%s2093_s9 + $0xd4] ss:$8 sps:$4 sm:$0xff]  }
 0x18b   : > { %1115 = vmatpush1.bf16.msra.mxu1 %v1839_v33  ;;  %v1854_v33 = vld [vmem:[%s2093_s9 + $0xd0] ss:$8 sps:$4 sm:$0xff]  }
 0x18c   : > { %1116 = vmatprep.subr.bf16.mxu1 %v1844_v16  ;;  %v1859_v16 = vld [vmem:[%s2093_s9 + $0xe4] ss:$8 sps:$4 sm:$0xff]  }
 0x18f   : > { %1117 = vmatpush1.bf16.msra.mxu1 %v1842_v17  ;;  %v1857_v17 = vld [vmem:[%s2093_s9 + $0xe0] ss:$8 sps:$4 sm:$0xff]  }
 0x190   : > { %1118 = vmatprep.subr.bf16.mxu1 %v1847_v18  ;;  %v1860_v18 = vld [vmem:[%s2093_s9 + $0xf0] ss:$8 sps:$4 sm:$0xff]  }
 0x193   : > { %1119 = vmatpush1.bf16.msra.mxu1 %v1845_v19  ;;  %v2479_v19 = vld [vmem:[%s2093_s9 + $0x184] ss:$8 sps:$4 sm:$0xff]  }
 0x194   : > { %1120 = vmatprep.subr.bf16.mxu1 %v1850_v61  ;;  %v2484_v61 = vld [vmem:[%s2093_s9 + $0x180] ss:$8 sps:$4 sm:$0xff]  }
 0x197   : > { %1121 = vmatpush1.bf16.msra.mxu1 %v1848_v20  ;;  %v2487_v20 = vld [vmem:[%s2093_s9 + $0x194] ss:$8 sps:$4 sm:$0xff]  }
 0x198   : > { %1122 = vmatprep.subr.bf16.mxu1 %v1853_v21  ;;  %v2492_v21 = vld [vmem:[%s2093_s9 + $0x190] ss:$8 sps:$4 sm:$0xff]  }
 0x19b   : > { %1123 = vmatpush1.bf16.msra.mxu1 %v1851_v22  ;;  %v2495_v22 = vld [vmem:[%s2093_s9 + $0x1a4] ss:$8 sps:$4 sm:$0xff]  }
 0x19c   : > { %1124 = vmatprep.subr.bf16.mxu1 %v1856_v23  ;;  %v2500_v23 = vld [vmem:[%s2093_s9 + $0x1a0] ss:$8 sps:$4 sm:$0xff]  }
 0x19f   : > { %1125 = vmatpush1.bf16.msra.mxu1 %v1854_v33  ;;  %v2503_v33 = vld [vmem:[%s2093_s9 + $0x1b4] ss:$8 sps:$4 sm:$0xff]  }
 0x1a0   : > { %1126 = vmatprep.subr.bf16.mxu1 %v1859_v16  ;;  %v2508_v16 = vld [vmem:[%s2093_s9 + $0x1b0] ss:$8 sps:$4 sm:$0xff]  }
 0x1a3   : > { %1127 = vmatpush1.bf16.msra.mxu1 %v1857_v17  ;;  %v2511_v17 = vld [vmem:[%s2093_s9 + $0x1c4] ss:$8 sps:$4 sm:$0xff]  }
 0x1a4   : > { %1128 = vmatprep.subr.bf16.mxu1 %v1862_v14  ;;  %v2471_v14 = vld [vmem:[%s2093_s9 + $0x174] ss:$8 sps:$4 sm:$0xff]   ;;  %2942 = vst [vmem:[#allocation26_spill] sm:$0xff] %v2511_v17 }
 0x1a7   : > { %1129 = vmatpush1.bf16.msra.mxu1 %v1860_v18  ;;  %v2516_v18 = vld [vmem:[%s2093_s9 + $0x1c0] ss:$8 sps:$4 sm:$0xff]  }
 0x1a8   : > { %2943 = vst [vmem:[#allocation27_spill] sm:$0xff] %v2516_v18 }
 0x1aa   : > { %1131 = vmatmul.mubr.bf16.vlgmr.msra.gmra.mrb[16].mxu1 %v2187_v27  ;;  %v2416_v27 = vld [vmem:[%s2093_s9 + $0x104] ss:$8 sps:$4 sm:$0xff]  }
 0x1ab   : > { %1140 = vmatprep.mubr.bf16.mxu1 %v2288_v59  ;;  %1678 = vmatprep.subr.bf16.mxu1 %v2416_v27  ;;  %v2447_v59 = vld [vmem:[%s2093_s9 + $0x144] ss:$8 sps:$4 sm:$0xff]  }
 0x1b2   : > { %1141 = vmatmul.mubr.bf16.gmra.mrb[20].mxu1 %v2193_v29  ;;  %v2419_v29 = vld [vmem:[%s2093_s9 + $0x100] ss:$8 sps:$4 sm:$0xff]  }
 0x1b3   : > { %1150 = vmatprep.mubr.bf16.mxu1 %v2314_v3  ;;  %1694 = vmatpush1.bf16.msra.mxu1 %v2419_v29  ;;  %v2455_v3 = vld [vmem:[%s2093_s9 + $0x154] ss:$8 sps:$4 sm:$0xff]  }
 0x1ba   : > { %1151 = vmatmul.mubr.bf16.gmra.mrb[24].mxu1 %v2204_v32  ;;  %v2422_v32 = vld [vmem:[%s2093_s9 + $0x114] ss:$8 sps:$4 sm:$0xff]  }
 0x1bb   : > { %1160 = vmatprep.mubr.bf16.mxu1 %v2307_v1  ;;  %1679 = vmatprep.subr.bf16.mxu1 %v2422_v32  ;;  %v2452_v1 = vld [vmem:[%s2093_s9 + $0x140] ss:$8 sps:$4 sm:$0xff]  }
 0x1c2   : > { %1161 = vmatmul.mubr.bf16.gmra.mrb[28].mxu1 %v2218_v38  ;;  %v2428_v38 = vld [vmem:[%s2093_s9 + $0x110] ss:$8 sps:$4 sm:$0xff]  }
 0x1c3   : > { %1170 = vmatprep.mubr.bf16.mxu1 %v2334_v9  ;;  %1695 = vmatpush1.bf16.msra.mxu1 %v2428_v38  ;;  %v2463_v9 = vld [vmem:[%s2093_s9 + $0x164] ss:$8 sps:$4 sm:$0xff]  }
 0x1ca   : > { %1171 = vmatmul.mubr.bf16.gmra.mrb[32].mxu1 %v2228_v41  ;;  %v2431_v41 = vld [vmem:[%s2093_s9 + $0x124] ss:$8 sps:$4 sm:$0xff]  }
 0x1cb   : > { %1180 = vmatprep.mubr.bf16.mxu1 %v2327_v7  ;;  %1680 = vmatprep.subr.bf16.mxu1 %v2431_v41  ;;  %v2460_v7 = vld [vmem:[%s2093_s9 + $0x150] ss:$8 sps:$4 sm:$0xff]  }
 0x1d2   : > { %1181 = vmatmul.mubr.bf16.gmra.mrb[36].mxu1 %v2238_v44  ;;  %v2436_v44 = vld [vmem:[%s2093_s9 + $0x120] ss:$8 sps:$4 sm:$0xff]  }
 0x1d3   : > { %1190 = vmatprep.mubr.bf16.mxu1 %v2354_v15  ;;  %1696 = vmatpush1.bf16.msra.mxu1 %v2436_v44  ;;  %v2476_v15 = vld [vmem:[%s2093_s9 + $0x170] ss:$8 sps:$4 sm:$0xff]  }
 0x1da   : > { %1191 = vmatmul.mubr.bf16.gmra.mrb[40].mxu1 %v2248_v47  ;;  %v2439_v47 = vld [vmem:[%s2093_s9 + $0x134] ss:$8 sps:$4 sm:$0xff]  }
 0x1db   : > { %1200 = vmatprep.mubr.bf16.mxu1 %v2347_v13  ;;  %1681 = vmatprep.subr.bf16.mxu1 %v2439_v47  ;;  %v2468_v13 = vld [vmem:[%s2093_s9 + $0x160] ss:$8 sps:$4 sm:$0xff]  }
 0x1e2   : > { %1201 = vmatmul.mubr.bf16.gmra.mrb[44].mxu1 %v2254_v48  ;;  %v2444_v48 = vld [vmem:[%s2093_s9 + $0x130] ss:$8 sps:$4 sm:$0xff]  }
 0x1e3   : > { %1697 = vmatpush1.bf16.msra.mxu1 %v2444_v48 }
 0x1e4   : > { %1682 = vmatprep.subr.bf16.mxu1 %v2447_v59 }
 0x1e7   : > { %1698 = vmatpush1.bf16.msra.mxu1 %v2452_v1 }
 0x1e8   : > { %1683 = vmatprep.subr.bf16.mxu1 %v2455_v3 }
 0x1eb   : > { %1699 = vmatpush1.bf16.msra.mxu1 %v2460_v7 }
 0x1ec   : > { %1684 = vmatprep.subr.bf16.mxu1 %v2463_v9 }
 0x1ef   : > { %1700 = vmatpush1.bf16.msra.mxu1 %v2468_v13 }
 0x1f0   : > { %1685 = vmatprep.subr.bf16.mxu1 %v2471_v14 }
 0x1f3   : > { %1701 = vmatpush1.bf16.msra.mxu1 %v2476_v15 }
 0x1f4   : > { %1686 = vmatprep.subr.bf16.mxu1 %v2479_v19 }
 0x1f7   : > { %1702 = vmatpush1.bf16.msra.mxu1 %v2484_v61 }
 0x1f8   : > { %1687 = vmatprep.subr.bf16.mxu1 %v2487_v20 }
 0x1fb   : > { %1703 = vmatpush1.bf16.msra.mxu1 %v2492_v21 }
 0x1fc   : > { %1688 = vmatprep.subr.bf16.mxu1 %v2495_v22 }
 0x1ff   : > { %1704 = vmatpush1.bf16.msra.mxu1 %v2500_v23 }
 0x200   : > { %1689 = vmatprep.subr.bf16.mxu1 %v2503_v33 }
 0x203   : > { %1705 = vmatpush1.bf16.msra.mxu1 %v2508_v16 }
 0x204   : > { %1690 = vmatprep.subr.bf16.mxu1 %v2511_v17 }
 0x207   : > { %1706 = vmatpush1.bf16.msra.mxu1 %v2516_v18 }
 0x208   : > { %1691 = vmatprep.subr.bf16.mxu1 %v2519_v12 }
 0x20b   : > { %1707 = vmatpush1.bf16.msra.mxu1 %v2524_v11 }
 0x23d   : > { %v1632_v10 = vpop.f32.mrb[0].mxu1 }
 0x23e   : > { %v527_v8 = vmul.f32 2.0, %v1632_v10  ;;  %v462_v6 = vpop.f32.mrb[1].mxu1 }
 0x23f   : > { %v525_v5 = vmul.f32 2.0, %v462_v6  ;;  %v1633_v4 = vpop.f32.mrb[2].mxu1 }
 0x240   : > { %v528_v2 = vmul.f32 2.0, %v1633_v4  ;;  %v465_v0 = vpop.f32.mrb[3].mxu1  ;;  %v543_v62 = vsub.f32 %v527_v8, %v2183_v26 }
 0x241   : > { %v526_v63 = vmul.f32 2.0, %v465_v0  ;;  %v541_v58 = vsub.f32 %v525_v5, %v2179_v24 }
 0x242   : > { %v544_v60 = vsub.f32 %v528_v2, %v2189_v28 }
 0x243   : > { %v542_v57 = vsub.f32 %v526_v63, %v2181_v25 }
 0x244   : > { %v2531_v56 = vpack.c.bf16 %v544_v60, %v543_v62 }
 0x245   : > { %v1636_v12 = vpop.f32.mrb[4].mxu1  ;;  %v2533_v11 = vpack.c.bf16 %v542_v57, %v541_v58 }
 0x246   : > { %v531_v10 = vmul.f32 2.0, %v1636_v12  ;;  %v478_v18 = vpop.f32.mrb[5].mxu1 }
 0x247   : > { %v529_v6 = vmul.f32 2.0, %v478_v18  ;;  %v1637_v17 = vpop.f32.mrb[6].mxu1  ;;  %1646 = vmatprep.subr.bf16.mxu0 %v2533_v11 }
 0x248   : > { %v532_v0 = vmul.f32 2.0, %v1637_v17  ;;  %v481_v4 = vpop.f32.mrb[7].mxu1  ;;  %1647 = vmatpush3.bf16.msra.mxu0 %v2533_v11  ;;  %v547_v24 = vsub.f32 %v531_v10, %v2206_v34 }
 0x249   : > { %v530_v26 = vmul.f32 2.0, %v481_v4  ;;  %1648 = vmatprep.subr.bf16.mxu0 %v2531_v56  ;;  %v545_v28 = vsub.f32 %v529_v6, %v2195_v30 }
 0x24a   : > { %v548_v25 = vsub.f32 %v532_v0, %v2208_v35 }
 0x24b   : > { %v546_v57 = vsub.f32 %v530_v26, %v2197_v31 }
 0x24c   : > { %1649 = vmatpush3.bf16.msra.mxu0 %v2531_v56  ;;  %v2543_v58 = vpack.c.bf16 %v548_v25, %v547_v24 }
 0x24d   : > { %v1640_v60 = vpop.f32.mrb[8].mxu1  ;;  %v2545_v62 = vpack.c.bf16 %v546_v57, %v545_v28 }
 0x24e   : > { %v535_v63 = vmul.f32 2.0, %v1640_v60  ;;  %v494_v2 = vpop.f32.mrb[9].mxu1 }
 0x24f   : > { %v533_v5 = vmul.f32 2.0, %v494_v2  ;;  %v1641_v8 = vpop.f32.mrb[10].mxu1  ;;  %1650 = vmatprep.subr.bf16.mxu0 %v2545_v62 }
 0x250   : > { %v536_v34 = vmul.f32 2.0, %v1641_v8  ;;  %v497_v12 = vpop.f32.mrb[11].mxu1  ;;  %1651 = vmatpush3.bf16.msra.mxu0 %v2545_v62  ;;  %v551_v31 = vsub.f32 %v535_v63, %v2221_v39  ;;  %v2951_v8 = vld [vmem:[#allocation11_spill] sm:$0xff] }
 0x251   : > { %v534_v30 = vmul.f32 2.0, %v497_v12  ;;  %1652 = vmatprep.subr.bf16.mxu0 %v2543_v58  ;;  %v549_v17 = vsub.f32 %v533_v5, %v2211_v36 }
 0x252   : > { %v552_v35 = vsub.f32 %v536_v34, %v2223_v40 }
 0x253   : > { %v550_v18 = vsub.f32 %v534_v30, %v2213_v37  ;;  %v2952_v30 = vld [vmem:[#allocation12_spill] sm:$0xff] }
 0x254   : > { %1653 = vmatpush3.bf16.msra.mxu0 %v2543_v58  ;;  %v2555_v10 = vpack.c.bf16 %v552_v35, %v551_v31  ;;  %v2953_v35 = vld [vmem:[#allocation13_spill] sm:$0xff] }
 0x255   : > { %v1644_v6 = vpop.f32.mrb[12].mxu1  ;;  %v2557_v0 = vpack.c.bf16 %v550_v18, %v549_v17 }
 0x256   : > { %v539_v4 = vmul.f32 2.0, %v1644_v6  ;;  %v510_v26 = vpop.f32.mrb[13].mxu1 }
 0x257   : > { %v537_v24 = vmul.f32 2.0, %v510_v26  ;;  %v1645_v25 = vpop.f32.mrb[14].mxu1  ;;  %1654 = vmatprep.subr.bf16.mxu0 %v2557_v0 }
 0x258   : > { %v540_v39 = vmul.f32 2.0, %v1645_v25  ;;  %v513_v28 = vpop.f32.mrb[15].mxu1  ;;  %1655 = vmatpush3.bf16.msra.mxu0 %v2557_v0  ;;  %v555_v37 = vsub.f32 %v539_v4, %v2241_v45  ;;  %v2948_v45 = vld [vmem:[#allocation28_spill] sm:$0xff] }
 0x259   : > { %v538_v36 = vmul.f32 2.0, %v513_v28  ;;  %1656 = vmatprep.subr.bf16.mxu0 %v2555_v10  ;;  %v553_v57 = vsub.f32 %v537_v24, %v2231_v42  ;;  %v2946_v42 = vld [vmem:[#allocation26_spill] sm:$0xff] }
 0x25a   : > { %v556_v40 = vsub.f32 %v540_v39, %v2243_v46  ;;  %v2949_v46 = vld [vmem:[#allocation29_spill] sm:$0xff]  ;;  %v2954_v28 = vld [vmem:[#allocation14_spill] sm:$0xff] }
 0x25b   : > { %v554_v60 = vsub.f32 %v538_v36, %v2233_v43  ;;  %v2947_v43 = vld [vmem:[#allocation27_spill] sm:$0xff] }
 0x25c   : > { %1657 = vmatpush3.bf16.msra.mxu0 %v2555_v10  ;;  %v2567_v63 = vpack.c.bf16 %v556_v40, %v555_v37 }
 0x25d   : > { %v2569_v2 = vpack.c.bf16 %v554_v60, %v553_v57  ;;  %v2955_v57 = vld [vmem:[#allocation15_spill] sm:$0xff] }
 0x25f   : > { %1658 = vmatprep.subr.bf16.mxu0 %v2569_v2 }
 0x260   : > { %1659 = vmatpush3.bf16.msra.mxu0 %v2569_v2 }
 0x261   : > { %1660 = vmatprep.subr.bf16.mxu0 %v2567_v63 }
 0x264   : > { %1661 = vmatpush3.bf16.msra.mxu0 %v2567_v63 }
 0x265   : > { %1211 = vmatprep.subr.bf16.mxu0 %v2416_v27 }
 0x267   : > { %1663 = vmatmul.mubr.bf16.vlgmr.msra.gmra.mrb[16].mxu0 %v2259_v49  ;;  %v1907_v49 = vld [vmem:[%s2093_s9 + $0x1e4] ss:$8 sps:$4 sm:$0xff]  }
 0x268   : > { %1666 = vmatprep.mubr.bf16.mxu0 %v2261_v50  ;;  %1212 = vmatpush1.bf16.msra.mxu0 %v2419_v29  ;;  %v1905_v50 = vld [vmem:[%s2093_s9 + $0x1e0] ss:$8 sps:$4 sm:$0xff]  }
 0x269   : > { %1213 = vmatprep.subr.bf16.mxu0 %v2422_v32  ;;  %1692 = vmatprep.subr.bf16.mxu1 %v1907_v49 }
 0x26a   : > { %1708 = vmatpush1.bf16.msra.mxu1 %v1905_v50 }
 0x26c   : > { %1214 = vmatpush1.bf16.msra.mxu0 %v2428_v38 }
 0x26d   : > { %1215 = vmatprep.subr.bf16.mxu0 %v2431_v41 }
 0x26f   : > { %1667 = vmatmul.mubr.bf16.gmra.mrb[20].mxu0 %v2265_v51  ;;  %v1910_v51 = vld [vmem:[%s2093_s9 + $0x1f4] ss:$8 sps:$4 sm:$0xff]  }
 0x270   : > { %1670 = vmatprep.mubr.bf16.mxu0 %v2267_v52  ;;  %1216 = vmatpush1.bf16.msra.mxu0 %v2436_v44  ;;  %v1908_v52 = vld [vmem:[%s2093_s9 + $0x1f0] ss:$8 sps:$4 sm:$0xff]  }
 0x271   : > { %1217 = vmatprep.subr.bf16.mxu0 %v2439_v47  ;;  %1693 = vmatprep.subr.bf16.mxu1 %v1910_v51 }
 0x272   : > { %1709 = vmatpush1.bf16.msra.mxu1 %v1908_v52 }
 0x274   : > { %1218 = vmatpush1.bf16.msra.mxu0 %v2444_v48 }
 0x275   : > { %1219 = vmatprep.subr.bf16.mxu0 %v2447_v59 }
 0x277   : > { %1671 = vmatmul.mubr.bf16.gmra.mrb[24].mxu0 %v2271_v53 }
 0x278   : > { %1674 = vmatprep.mubr.bf16.mxu0 %v2273_v54  ;;  %1220 = vmatpush1.bf16.msra.mxu0 %v2452_v1 }
 0x279   : > { %1221 = vmatprep.subr.bf16.mxu0 %v2455_v3 }
 0x27c   : > { %1222 = vmatpush1.bf16.msra.mxu0 %v2460_v7 }
 0x27d   : > { %1223 = vmatprep.subr.bf16.mxu0 %v2463_v9  ;;  %v2614_v53 = vpop.f32.mrb[16].mxu1 }
 0x27e   : > { %v2616_v54 = vpop.f32.mrb[17].mxu1 }
 0x27f   : > { %1675 = vmatmul.mubr.bf16.gmra.mrb[28].mxu0 %v2277_v55  ;;  %v2618_v55 = vpop.f32.mrb[18].mxu1 }
 0x280   : > { %1224 = vmatpush1.bf16.msra.mxu0 %v2468_v13  ;;  %v2620_v27 = vpop.f32.mrb[19].mxu1 }
 0x281   : > { %1225 = vmatprep.subr.bf16.mxu0 %v2471_v14 }
 0x284   : > { %1226 = vmatpush1.bf16.msra.mxu0 %v2476_v15 }
 0x285   : > { %1227 = vmatprep.subr.bf16.mxu0 %v2479_v19  ;;  %v2622_v29 = vpop.f32.mrb[20].mxu1 }
 0x286   : > { %v2624_v32 = vpop.f32.mrb[21].mxu1 }
 0x287   : > { %v2626_v38 = vpop.f32.mrb[22].mxu1 }
 0x288   : > { %1228 = vmatpush1.bf16.msra.mxu0 %v2484_v61  ;;  %v2628_v41 = vpop.f32.mrb[23].mxu1 }
 0x289   : > { %1229 = vmatprep.subr.bf16.mxu0 %v2487_v20 }
 0x28c   : > { %1230 = vmatpush1.bf16.msra.mxu0 %v2492_v21 }
 0x28d   : > { %1231 = vmatprep.subr.bf16.mxu0 %v2495_v22  ;;  %v2630_v44 = vpop.f32.mrb[24].mxu1 }
 0x28e   : > { %v2632_v47 = vpop.f32.mrb[25].mxu1 }
 0x28f   : > { %v2634_v48 = vpop.f32.mrb[26].mxu1 }
 0x290   : > { %1232 = vmatpush1.bf16.msra.mxu0 %v2500_v23  ;;  %v2636_v59 = vpop.f32.mrb[27].mxu1  ;;  %v2950_v23 = vld [vmem:[#allocation10_spill] sm:$0xff] }
 0x291   : > { %1233 = vmatprep.subr.bf16.mxu0 %v2503_v33 }
 0x294   : > { %1234 = vmatpush1.bf16.msra.mxu0 %v2508_v16 }
 0x295   : > { %1235 = vmatprep.subr.bf16.mxu0 %v2946_v42  ;;  %v2638_v1 = vpop.f32.mrb[28].mxu1 }
 0x296   : > { %v2640_v3 = vpop.f32.mrb[29].mxu1 }
 0x297   : > { %v2642_v7 = vpop.f32.mrb[30].mxu1 }
 0x298   : > { %1236 = vmatpush1.bf16.msra.mxu0 %v2947_v43  ;;  %v2644_v9 = vpop.f32.mrb[31].mxu1  ;;  %v2956_v43 = vld [vmem:[#allocation16_spill] sm:$0xff] }
 0x299   : > { %1237 = vmatprep.subr.bf16.mxu0 %v2948_v45 }
 0x29c   : > { %1238 = vmatpush1.bf16.msra.mxu0 %v2949_v46  ;;  %v2957_v46 = vld [vmem:[#allocation17_spill] sm:$0xff] }
 0x29d   : > { %1239 = vmatprep.subr.bf16.mxu0 %v1907_v49  ;;  %v2646_v13 = vpop.f32.mrb[32].mxu1 }
 0x29e   : > { %v2648_v14 = vpop.f32.mrb[33].mxu1 }
 0x29f   : > { %v2650_v15 = vpop.f32.mrb[34].mxu1 }
 0x2a0   : > { %1240 = vmatpush1.bf16.msra.mxu0 %v1905_v50 }
 0x2a1   : > { %1241 = vmatprep.subr.bf16.mxu0 %v1910_v51 }
 0x2a4   : > { %1242 = vmatpush1.bf16.msra.mxu0 %v1908_v52 }
 0x33a   : > { %v1664_v19 = vpop.f32.mrb[16].mxu0 }
 0x33b   : > { %v664_v61 = vmul.f32 2.0, %v1664_v19  ;;  %v599_v20 = vpop.f32.mrb[17].mxu0 }
 0x33c   : > { %v662_v21 = vmul.f32 2.0, %v599_v20  ;;  %v1665_v22 = vpop.f32.mrb[18].mxu0 }
 0x33d   : > { %v680_v33 = vsub.f32 %v664_v61, %v2950_v23  ;;  %v665_v16 = vmul.f32 2.0, %v1665_v22  ;;  %v602_v5 = vpop.f32.mrb[19].mxu0  ;;  %v2958_v22 = vld [vmem:[#allocation18_spill] sm:$0xff] }
 0x33e   : > { %v678_v34 = vsub.f32 %v662_v21, %v2951_v8  ;;  %v663_v12 = vmul.f32 2.0, %v602_v5 }
 0x33f   : > { %v681_v31 = vsub.f32 %v665_v16, %v2952_v30  ;;  %v2961_v30 = vld [vmem:[#allocation21_spill] sm:$0xff] }
 0x340   : > { %v679_v17 = vsub.f32 %v663_v12, %v2953_v35 }
 0x341   : > { %v695_v18 = vpack.c.bf16 %v681_v31, %v680_v33 }
 0x342   : > { %v1668_v6 = vpop.f32.mrb[20].mxu0  ;;  %v694_v4 = vpack.c.bf16 %v679_v17, %v678_v34  ;;  %v2960_v34 = vld [vmem:[#allocation20_spill] sm:$0xff] }
 0x343   : > { %v668_v26 = vmul.f32 2.0, %v1668_v6  ;;  %v615_v24 = vpop.f32.mrb[21].mxu0 }
 0x344   : > { %v666_v25 = vmul.f32 2.0, %v615_v24  ;;  %v1669_v39 = vpop.f32.mrb[22].mxu0  ;;  %1243 = vmatprep.mubr.bf16.mxu0 %v694_v4 }
 0x345   : > { %v684_v36 = vsub.f32 %v668_v26, %v2954_v28  ;;  %v669_v37 = vmul.f32 2.0, %v1669_v39  ;;  %v618_v40 = vpop.f32.mrb[23].mxu0  ;;  %1244 = vmatmul.mubr.bf16.vlgmr.msra.gmra.mrb[32].mxu0 %v2533_v11  ;;  %v2959_v11 = vld [vmem:[#allocation19_spill] sm:$0xff] }
 0x346   : > { %v682_v60 = vsub.f32 %v666_v25, %v2955_v57  ;;  %v667_v42 = vmul.f32 2.0, %v618_v40  ;;  %1253 = vmatprep.mubr.bf16.mxu0 %v695_v18  ;;  %v2962_v25 = vld [vmem:[#allocation22_spill] sm:$0xff]  ;;  %v2964_v57 = vld [vmem:[#allocation24_spill] sm:$0xff] }
 0x347   : > { %v685_v45 = vsub.f32 %v669_v37, %v2956_v43 }
 0x348   : > { %v683_v49 = vsub.f32 %v667_v42, %v2957_v46  ;;  %v2965_v42 = vld [vmem:[#allocation25_spill] sm:$0xff] }
 0x349   : > { %v697_v50 = vpack.c.bf16 %v685_v45, %v684_v36 }
 0x34a   : > { %v1672_v51 = vpop.f32.mrb[24].mxu0  ;;  %v696_v52 = vpack.c.bf16 %v683_v49, %v682_v60 }
 0x34b   : > { %v672_v19 = vmul.f32 2.0, %v1672_v51  ;;  %v631_v61 = vpop.f32.mrb[25].mxu0 }
 0x34c   : > { %v670_v20 = vmul.f32 2.0, %v631_v61  ;;  %v1673_v21 = vpop.f32.mrb[26].mxu0  ;;  %v766_v61 = vld [vmem:[%s2104_s8] sm:$0x3] }
 0x34d   : > { %v688_v23 = vsub.f32 %v672_v19, %v2958_v22  ;;  %v673_v33 = vmul.f32 2.0, %v1673_v21  ;;  %v634_v16 = vpop.f32.mrb[27].mxu0  ;;  %1254 = vmatmul.mubr.bf16.gmra.mrb[36].mxu0 %v2531_v56  ;;  %v2963_v56 = vld [vmem:[#allocation23_spill] sm:$0xff] }
 0x34e   : > { %v686_v5 = vsub.f32 %v670_v20, %v2959_v11  ;;  %v671_v8 = vmul.f32 2.0, %v634_v16  ;;  %1263 = vmatprep.mubr.bf16.mxu0 %v696_v52 }
 0x34f   : > { %v689_v12 = vsub.f32 %v673_v33, %v2960_v34 }
 0x350   : > { %v687_v31 = vsub.f32 %v671_v8, %v2961_v30 }
 0x351   : > { %v699_v35 = vpack.c.bf16 %v689_v12, %v688_v23 }
 0x352   : > { %v1676_v17 = vpop.f32.mrb[28].mxu0  ;;  %v698_v18 = vpack.c.bf16 %v687_v31, %v686_v5 }
 0x353   : > { %v676_v6 = vmul.f32 2.0, %v1676_v17  ;;  %v647_v4 = vpop.f32.mrb[29].mxu0 }
 0x354   : > { %v674_v26 = vmul.f32 2.0, %v647_v4  ;;  %v1677_v24 = vpop.f32.mrb[30].mxu0 }
 0x355   : > { %v692_v39 = vsub.f32 %v676_v6, %v2962_v25  ;;  %v677_v28 = vmul.f32 2.0, %v1677_v24  ;;  %v650_v36 = vpop.f32.mrb[31].mxu0  ;;  %1264 = vmatmul.mubr.bf16.gmra.mrb[40].mxu0 %v2545_v62  ;;  %v2676_v62 = vpop.f32.mrb[35].mxu1 }
 0x356   : > { %v690_v37 = vsub.f32 %v674_v26, %v2963_v56  ;;  %v675_v40 = vmul.f32 2.0, %v650_v36  ;;  %1273 = vmatprep.mubr.bf16.mxu0 %v697_v50  ;;  %v2678_v49 = vpop.f32.mrb[36].mxu1 }
 0x357   : > { %v693_v60 = vsub.f32 %v677_v28, %v2964_v57  ;;  %v2680_v50 = vpop.f32.mrb[37].mxu1 }
 0x358   : > { %v691_v43 = vsub.f32 %v675_v40, %v2965_v42  ;;  %v2682_v51 = vpop.f32.mrb[38].mxu1 }
 0x359   : > { %v701_v45 = vpack.c.bf16 %v693_v60, %v692_v39 }
 0x35a   : > { %v700_v46 = vpack.c.bf16 %v691_v43, %v690_v37 }
 0x35c   : > { %1303 = vmatprep.mubr.bf16.mxu1 %v700_v46 }
 0x35d   : > { %1274 = vmatmul.mubr.bf16.gmra.mrb[44].mxu0 %v2543_v58  ;;  %1304 = vmatmul.mubr.bf16.vlgmr.msra.gmra.mrb[40].mxu1 %v2569_v2  ;;  %v2684_v58 = vpop.f32.mrb[39].mxu1  ;;  %v768_v2 = vlaneseq }
 0x35e   : > { %1283 = vmatprep.mubr.bf16.mxu0 %v698_v18  ;;  %1313 = vmatprep.mubr.bf16.mxu1 %v701_v45 }
 0x35f   : > { %v769_v52 = vshrl.u32 %v768_v2, 7 }
 0x361   : > { %v770_v19 = vsub.s32 0, %v769_v52 }
 0x363   : > { %v2687_v20 = vrot.slane %v766_v61, %v770_v19 }
 0x365   : > { %1284 = vmatmul.mubr.bf16.gmra.mrb[48].mxu0 %v2557_v0  ;;  %1314 = vmatmul.mubr.bf16.gmra.mrb[44].mxu1 %v2567_v63  ;;  %v774_v0 = vsub.s32 1, %v769_v52  ;;  %v1137_v23 = vadd.f32 %v2618_v55, %v2687_v20  ;;  %v1147_v31 = vadd.f32 %v2626_v38, %v2687_v20  ;;  %v1157_v25 = vadd.f32 %v2634_v48, %v2687_v20 }
 0x366   : > { %1293 = vmatprep.mubr.bf16.mxu0 %v699_v35  ;;  %v1167_v42 = vadd.f32 %v2642_v7, %v2687_v20 }
 0x367   : > { %v2689_v63 = vrot.slane %v766_v61, %v774_v0 }
 0x369   : > { %v1135_v21 = vadd.f32 %v2616_v54, %v2689_v63  ;;  %v1139_v11 = vadd.f32 %v2620_v27, %v2689_v63  ;;  %v1143_v54 = vadd.f32 %v2622_v29, %v2687_v20  ;;  %v1145_v55 = vadd.f32 %v2624_v32, %v2689_v63 }
 0x36a   : > { %v1149_v17 = vadd.f32 %v2628_v41, %v2689_v63  ;;  %v1153_v32 = vadd.f32 %v2630_v44, %v2687_v20  ;;  %v1155_v38 = vadd.f32 %v2632_v47, %v2689_v63  ;;  %v1159_v28 = vadd.f32 %v2636_v59, %v2689_v63 }
 0x36b   : > { %v1163_v47 = vadd.f32 %v2638_v1, %v2687_v20  ;;  %v1165_v48 = vadd.f32 %v2640_v3, %v2689_v63  ;;  %v1169_v2 = vadd.f32 %v2644_v9, %v2689_v63  ;;  %v1173_v9 = vadd.f32 %v2646_v13, %v2687_v20 }
 0x36d   : > { %1294 = vmatmul.mubr.bf16.gmra.mrb[52].mxu0 %v2555_v10  ;;  %v1133_v10 = vadd.f32 %v2614_v53, %v2687_v20 }
 0x418   : > { %v1245_v22 = vpop.f32.mrb[32].mxu0 }
 0x419   : > { %v2697_v33 = vadd.f32 %v1245_v22, %v1133_v10  ;;  %v1247_v16 = vpop.f32.mrb[33].mxu0 }
 0x41a   : > { %v2701_v5 = vadd.f32 %v1247_v16, %v1135_v21  ;;  %v1249_v8 = vpop.f32.mrb[34].mxu0 }
 0x41b   : > { %v2703_v34 = vadd.f32 %v1249_v8, %v1137_v23  ;;  %v1251_v12 = vpop.f32.mrb[35].mxu0  ;;  %v1175_v23 = vadd.f32 %v2648_v14, %v2689_v63  ;;  %v1177_v8 = vadd.f32 %v2650_v15, %v2687_v20 }
 0x41c   : > { %v2705_v53 = vadd.f32 %v1251_v12, %v1139_v11 }
 0x420   : > { %v1255_v30 = vpop.f32.mrb[36].mxu0 }
 0x421   : > { %v2713_v35 = vadd.f32 %v1255_v30, %v1143_v54  ;;  %v1257_v27 = vpop.f32.mrb[37].mxu0 }
 0x422   : > { %v2717_v18 = vadd.f32 %v1257_v27, %v1145_v55  ;;  %v1259_v6 = vpop.f32.mrb[38].mxu0 }
 0x423   : > { %v2719_v4 = vadd.f32 %v1259_v6, %v1147_v31  ;;  %v1261_v26 = vpop.f32.mrb[39].mxu0  ;;  %v1179_v31 = vadd.f32 %v2676_v62, %v2689_v63  ;;  %v1185_v62 = vadd.f32 %v2680_v50, %v2689_v63  ;;  %v1329_v50 = vmax.f32 (!%p1529_p7), %v2703_v34, 0.0 }
 0x424   : > { %v2721_v29 = vadd.f32 %v1261_v26, %v1149_v17 }
 0x428   : > { %v1265_v24 = vpop.f32.mrb[40].mxu0 }
 0x429   : > { %v2729_v39 = vadd.f32 %v1265_v24, %v1153_v32  ;;  %v1267_v41 = vpop.f32.mrb[41].mxu0 }
 0x42a   : > { %v2733_v36 = vadd.f32 %v1267_v41, %v1155_v38  ;;  %v1269_v56 = vpop.f32.mrb[42].mxu0 }
 0x42b   : > { %v2735_v37 = vadd.f32 %v1269_v56, %v1157_v25  ;;  %v1271_v40 = vpop.f32.mrb[43].mxu0  ;;  %v1183_v25 = vadd.f32 %v2678_v49, %v2687_v20  ;;  %v1328_v49 = vmax.f32 (!%p1529_p7), %v2697_v33, 0.0 }
 0x42c   : > { %v2737_v44 = vadd.f32 %v1271_v40, %v1159_v28  ;;  %v1187_v28 = vadd.f32 %v2682_v51, %v2687_v20  ;;  %v1330_v51 = vmax.f32 (!%p1529_p7), %v2713_v35, 0.0 }
 0x430   : > { %v1275_v57 = vpop.f32.mrb[44].mxu0  ;;  %v1305_v60 = vpop.f32.mrb[40].mxu1 }
 0x431   : > { %v2745_v59 = vadd.f32 %v1275_v57, %v1163_v47  ;;  %v2748_v43 = vadd.f32 %v1305_v60, %v2687_v20  ;;  %v1277_v45 = vpop.f32.mrb[45].mxu0  ;;  %v1307_v46 = vpop.f32.mrb[41].mxu1  ;;  %v1189_v47 = vadd.f32 %v2684_v58, %v2689_v63  ;;  %v1333_v58 = vmax.f32 (!%p1529_p7), %v2735_v37, 0.0 }
 0x432   : > { %v1278_v52 = vadd.f32 %v1277_v45, %v1165_v48  ;;  %v2753_v1 = vadd.f32 %v1307_v46, %v2689_v63  ;;  %v1279_v3 = vpop.f32.mrb[46].mxu0  ;;  %v1309_v19 = vpop.f32.mrb[42].mxu1  ;;  %v1332_v46 = vmax.f32 (!%p1529_p7), %v2729_v39, 0.0 }
 0x433   : > { %v2755_v61 = vadd.f32 %v1279_v3, %v1167_v42  ;;  %v2758_v7 = vadd.f32 %v1309_v19, %v2687_v20  ;;  %v1281_v0 = vpop.f32.mrb[47].mxu0  ;;  %v1311_v10 = vpop.f32.mrb[43].mxu1  ;;  %v1344_v3 = vadd.f32 (!%p1529_p7), %v1328_v49, %v2701_v5  ;;  %v1345_v19 = vadd.f32 (!%p1529_p7), %v1329_v50, %v2705_v53 }
 0x434   : > { %v1282_v21 = vadd.f32 %v1281_v0, %v1169_v2  ;;  %v2761_v22 = vadd.f32 %v1311_v10, %v2689_v63  ;;  %v1346_v0 = vadd.f32 (!%p1529_p7), %v1330_v51, %v2717_v18 }
 0x435   : > { %v1335_v2 = vmax.f32 (!%p1529_p7), %v2755_v61, 0.0  ;;  %1360 = vst [vmem:[#allocation3] sm:$0xff] (!%p1529_p7), %v1344_v3  ;;  %1361 = vst [vmem:[#allocation3 + $0x8] sm:$0xff] (!%p1529_p7), %v1345_v19 }
 0x436   : > { %1362 = vst [vmem:[#allocation3 + $0x10] sm:$0xff] (!%p1529_p7), %v1346_v0 }
 0x438   : > { %v1285_v16 = vpop.f32.mrb[48].mxu0  ;;  %v1315_v11 = vpop.f32.mrb[44].mxu1 }
 0x439   : > { %v2769_v12 = vadd.f32 %v1285_v16, %v1173_v9  ;;  %v2772_v54 = vadd.f32 %v1315_v11, %v2687_v20  ;;  %v1287_v55 = vpop.f32.mrb[49].mxu0  ;;  %v1317_v30 = vpop.f32.mrb[45].mxu1  ;;  %v1348_v9 = vadd.f32 (!%p1529_p7), %v1332_v46, %v2733_v36  ;;  %v1351_v11 = vadd.f32 (!%p1529_p7), %v1335_v2, %v1282_v21 }
 0x43a   : > { %v1288_v27 = vadd.f32 %v1287_v55, %v1175_v23  ;;  %v1763_v13 = vadd.f32 %v1317_v30, %v2689_v63  ;;  %v1289_v17 = vpop.f32.mrb[50].mxu0  ;;  %v1319_v14 = vpop.f32.mrb[46].mxu1  ;;  %v1349_v23 = vadd.f32 (!%p1529_p7), %v1333_v58, %v2737_v44  ;;  %v1341_v36 = vmax.f32 (!%p1529_p7), %v2758_v7, 0.0 }
 0x43b   : > { %v2777_v6 = vadd.f32 %v1289_v17, %v1177_v8  ;;  %v2780_v26 = vadd.f32 %v1319_v14, %v2687_v20  ;;  %v1291_v15 = vpop.f32.mrb[51].mxu0  ;;  %v1321_v32 = vpop.f32.mrb[47].mxu1  ;;  %v1331_v20 = vmax.f32 (!%p1529_p7), %v2719_v4, 0.0  ;;  %v1336_v8 = vmax.f32 (!%p1529_p7), %v2769_v12, 0.0  ;;  %1364 = vst [vmem:[#allocation3 + $0x20] sm:$0xff] (!%p1529_p7), %v1348_v9  ;;  %1367 = vst [vmem:[#allocation3 + $0x38] sm:$0xff] (!%p1529_p7), %v1351_v11 }
 0x43c   : > { %v1292_v38 = vadd.f32 %v1291_v15, %v1179_v31  ;;  %v1765_v24 = vadd.f32 %v1321_v32, %v2689_v63  ;;  %v1334_v63 = vmax.f32 (!%p1529_p7), %v2745_v59, 0.0  ;;  %1365 = vst [vmem:[#allocation3 + $0x28] sm:$0xff] (!%p1529_p7), %v1349_v23  ;;  %v1342_v44 = vmax.f32 (!%p1529_p7), %v2772_v54, 0.0 }
 0x43d   : > { %v1347_v10 = vadd.f32 (!%p1529_p7), %v1331_v20, %v2721_v29  ;;  %v1337_v5 = vmax.f32 (!%p1529_p7), %v2777_v6, 0.0  ;;  %v1340_v29 = vmax.f32 (!%p1529_p7), %v2748_v43, 0.0  ;;  %v1352_v21 = vadd.f32 (!%p1529_p7), %v1336_v8, %v1288_v27 }
 0x43e   : > { %1327 = sbr.rel (%p1529_p7) target bundleno = 1098 (0x44a), region = 79  ;;  %v1350_v16 = vadd.f32 (!%p1529_p7), %v1334_v63, %v1278_v52  ;;  %v1343_v52 = vmax.f32 (!%p1529_p7), %v2780_v26, 0.0  ;;  %v1357_v14 = vadd.f32 (!%p1529_p7), %v2761_v22, %v1341_v36  ;;  %v1358_v15 = vadd.f32 (!%p1529_p7), %v1763_v13, %v1342_v44 }
 0x43f   : > { %1363 = vst [vmem:[#allocation3 + $0x18] sm:$0xff] (!%p1529_p7), %v1347_v10  ;;  %v1353_v55 = vadd.f32 (!%p1529_p7), %v1337_v5, %v1292_v38  ;;  %v1356_v17 = vadd.f32 (!%p1529_p7), %v2753_v1, %v1340_v29  ;;  %1368 = vst [vmem:[#allocation3 + $0x40] sm:$0xff] (!%p1529_p7), %v1352_v21 }
 0x440   : > { %v1295_v41 = vpop.f32.mrb[52].mxu0  ;;  %1366 = vst [vmem:[#allocation3 + $0x30] sm:$0xff] (!%p1529_p7), %v1350_v16  ;;  %v1359_v32 = vadd.f32 (!%p1529_p7), %v1765_v24, %v1343_v52  ;;  %1373 = vst [vmem:[#allocation3 + $0x68] sm:$0xff] (!%p1529_p7), %v1357_v14 }
 0x441   : > { %v2789_v56 = vadd.f32 %v1295_v41, %v1183_v25  ;;  %v1297_v40 = vpop.f32.mrb[53].mxu0  ;;  %1369 = vst [vmem:[#allocation3 + $0x48] sm:$0xff] (!%p1529_p7), %v1353_v55  ;;  %1372 = vst [vmem:[#allocation3 + $0x60] sm:$0xff] (!%p1529_p7), %v1356_v17 }
 0x442   : > { %v1298_v48 = vadd.f32 %v1297_v40, %v1185_v62  ;;  %v1299_v57 = vpop.f32.mrb[54].mxu0  ;;  %1374 = vst [vmem:[#allocation3 + $0x70] sm:$0xff] (!%p1529_p7), %v1358_v15  ;;  %1375 = vst [vmem:[#allocation3 + $0x78] sm:$0xff] (!%p1529_p7), %v1359_v32 }
 0x443   : > { %v2793_v60 = vadd.f32 %v1299_v57, %v1187_v28  ;;  %v1301_v42 = vpop.f32.mrb[55].mxu0  ;;  %v1338_v53 = vmax.f32 (!%p1529_p7), %v2789_v56, 0.0 }
 0x444   : > { %v1302_v45 = vadd.f32 %v1301_v42, %v1189_v47 }
 0x445   : > { %v1339_v18 = vmax.f32 %v2793_v60, 0.0  ;;  %v1354_v30 = vadd.f32 %v1338_v53, %v1298_v48 }
 0x447   : > { %v1355_v31 = vadd.f32 %v1339_v18, %v1302_v45  ;;  %1370 = vst [vmem:[#allocation3 + $0x50] sm:$0xff] %v1354_v30 }
 0x449   : > { %1371 = vst [vmem:[#allocation3 + $0x58] sm:$0xff] %v1355_v31 }
 0x44a PF: > { %p1530_p4 = scmp.ne.s32.totalorder %s2026_s19, 3 }
 0x44b   : > { %1380 = vst [vmem:[%s2902_s4] sm:$0xff] (!%p1530_p4), %v2697_v33  ;;  %1381 = vst [vmem:[%s2902_s4 + $0x8] sm:$0xff] (!%p1530_p4), %v2703_v34 }
 0x44c   : > { %1379 = sbr.rel (%p1530_p4) target bundleno = 1107 (0x453), region = 83  ;;  %1382 = vst [vmem:[%s2902_s4 + $0x10] sm:$0xff] (!%p1530_p4), %v2713_v35  ;;  %1383 = vst [vmem:[%s2902_s4 + $0x18] sm:$0xff] (!%p1530_p4), %v2719_v4 }
 0x44d   : > { %1384 = vst [vmem:[%s2902_s4 + $0x20] sm:$0xff] (!%p1530_p4), %v2729_v39  ;;  %1385 = vst [vmem:[%s2902_s4 + $0x28] sm:$0xff] (!%p1530_p4), %v2735_v37 }
 0x44e   : > { %1386 = vst [vmem:[%s2902_s4 + $0x30] sm:$0xff] (!%p1530_p4), %v2745_v59  ;;  %1387 = vst [vmem:[%s2902_s4 + $0x38] sm:$0xff] (!%p1530_p4), %v2755_v61 }
 0x44f   : > { %1388 = vst [vmem:[%s2902_s4 + $0x40] sm:$0xff] (!%p1530_p4), %v2769_v12  ;;  %1389 = vst [vmem:[%s2902_s4 + $0x48] sm:$0xff] (!%p1530_p4), %v2777_v6 }
 0x450   : > { %1390 = vst [vmem:[%s2902_s4 + $0x50] sm:$0xff] (!%p1530_p4), %v2789_v56  ;;  %1391 = vst [vmem:[%s2902_s4 + $0x58] sm:$0xff] (!%p1530_p4), %v2793_v60 }
 0x451   : > { %1392 = vst [vmem:[%s2902_s4 + $0x60] sm:$0xff] (!%p1530_p4), %v2748_v43  ;;  %1393 = vst [vmem:[%s2902_s4 + $0x68] sm:$0xff] (!%p1530_p4), %v2758_v7 }
 0x452   : > { %1394 = vst [vmem:[%s2902_s4 + $0x70] sm:$0xff] (!%p1530_p4), %v2772_v54  ;;  %1395 = vst [vmem:[%s2902_s4 + $0x78] sm:$0xff] (!%p1530_p4), %v2780_v26 }
 0x453 PF: > { %p14_p5 = scmp.ge.s32.totalorder %s2029_s20, 6   ;;  %s2966_s15 = smov %s1969_s16 }
 0x454   : > { %s2967_s16 = smov %s1973_s17  ;;  %s2968_s17 = smov %s2039_s23 }
 0x455   : > { %s2969_s18 = smov %s2029_s20  ;;  %16 = sbr.rel (!%p14_p5) target bundleno = 3 (0x3), region = 126 }
 0x45c   :  { %1407 = vsyncpa [#allocation5], 1 }
 0x45d   :  { %1409 = vsyncpa [#allocation5 + $0x1], 1 }

</bundles_post_ra>
